<compile_context>
chip_gen: v7x
topology: tpu7x:2x2x1
jax: 0.10.0
libtpu: 0.0.40
codegen_flags: <defaults>
</compile_context>

<pallas_src>
import functools
import math

import jax
import jax.numpy as jnp
from jax.experimental import pallas as pl
from jax.experimental.pallas import tpu as pltpu

_LANES = 128
_SUBLANES = 8


def _round_up(x, m):
    return -(-x // m) * m


def _causal_conv3d_kernel(x_ref, w_ref, o_ref, patch_ref, *,
                          taps, dilation, th, w8, cin, group, halo):
    """One grid step -> one (th*w8, cout_p) output tile.

    x_ref:     halo path: (1, dspan, th+pad_h, wp, Cin)  tile + causal halo
               fallback:  (1, Dp, Hp, wp, Cin)           full padded volume
    w_ref:     (KD*KH*KW*Cin, Cout_p)                    packed weights (grid-constant)
    o_ref:     (1, 1, th*w8, Cout_p)                     output tile
    patch_ref: (th, w8, KD*KH*KW*Cin)                    im2col scratch
    """
    dd, dh, dw = dilation
    n_taps = len(taps)

    if halo:
        d0, h0 = 0, 0                       # block already starts at the window
    else:
        d0 = pl.program_id(1)
        h0 = pl.multiple_of(pl.program_id(2) * th, _SUBLANES)

    # im2col: pack every (kd, kh, kw) tap window along the contraction axis.
    # `group` consecutive taps are concatenated so each patch store covers a
    # full, 128-aligned lane span (unmasked vst) instead of n_taps masked ones.
    for j0 in range(0, n_taps, group):
        sub = taps[j0:j0 + group]
        chunks = [
            x_ref[0, pl.ds(d0 + d_ * dd, 1), pl.ds(h0 + h_ * dh, th),
                  pl.ds(w_ * dw, w8), :].reshape(th, w8, cin)
            for (d_, h_, w_) in sub
        ]
        blk = chunks[0] if len(chunks) == 1 else jnp.concatenate(chunks, axis=-1)
        patch_ref[:, :, j0 * cin:(j0 + len(sub)) * cin] = blk

    # Single MXU matmul per output tile:
    # (th*w8, KD*KH*KW*Cin) x (KD*KH*KW*Cin, Cout_p) with f32 accumulation.
    lhs = patch_ref[...].reshape(th * w8, n_taps * cin)
    acc = jnp.dot(lhs, w_ref[...], preferred_element_type=jnp.float32)
    o_ref[0, 0, :, :] = acc.astype(o_ref.dtype)


def causal_conv3d_ndhwc(x, weight, kernel_size, dilation=(1, 1, 1), *,
                        compute_dtype=None, max_rows=2048,
                        vmem_budget_bytes=None):
    """Channels-last causal conv3d (preferred entry point, no transposes).

    x: (N, D, H, W, Cin); weight: (Cout, Cin, KD, KH, KW) (PyTorch layout).
    Returns (N, D, H, W, Cout).
    """
    N, D, H, W, Cin = x.shape
    Cout = weight.shape[0]
    KD, KH, KW = kernel_size
    dd, dh, dw = dilation
    pad_d, pad_h, pad_w = (KD - 1) * dd, (KH - 1) * dh, (KW - 1) * dw
    if min(pad_d, pad_h, pad_w) <= 0:
        # The PyTorch module's trailing crop `[..., :-0]` is itself degenerate
        # for kernel_size == 1; require k >= 2 per spatial dim.
        raise ValueError("kernel_size must be >= 2 in every spatial dim")

    out_dtype = x.dtype
    if compute_dtype is None:
        compute_dtype = x.dtype            # numerical parity by default;
                                           # pass bf16 explicitly for speed
    cb = jnp.dtype(compute_dtype).itemsize
    ob = jnp.dtype(out_dtype).itemsize

    cout_p = _round_up(Cout, _LANES)       # lane-dense output stores
    w8 = _round_up(W, _SUBLANES)           # sublane-aligned W
    wp = w8 + pad_w
    dspan = pad_d + 1                      # depth window per output frame
    n_taps = KD * KH * KW
    k_total = n_taps * Cin

    # ---- VMEM budget -> H tile size (th rows per step, multiple of 8). ----
    if vmem_budget_bytes is None:
        try:
            cap = int(pltpu.get_tpu_info().vmem_capacity_bytes)
        except Exception:                  # info unavailable -> conservative
            cap = 64 * 1024 * 1024
        vmem_budget_bytes = int(cap * 0.8)
    vmem_limit_bytes = min(112 * 1024 * 1024, int(vmem_budget_bytes) + (8 << 20))

    weight_bytes = 2 * k_total * cout_p * cb           # double-buffered by Pallas

    def working_set(t):
        x_blk = 2 * dspan * (t + pad_h) * wp * Cin * cb    # 2x input buffers
        o_blk = 2 * t * w8 * cout_p * ob                   # 2x output buffers
        patch = t * w8 * k_total * cb                      # im2col scratch
        acc = t * w8 * cout_p * 4                          # f32 matmul result
        return weight_bytes + x_blk + o_blk + patch + acc

    th_cap = max(_SUBLANES, (max_rows // w8) // _SUBLANES * _SUBLANES)
    th = min(_round_up(H, _SUBLANES), th_cap)
    while th > _SUBLANES and working_set(th) > vmem_budget_bytes:
        th -= _SUBLANES
    if working_set(th) > vmem_budget_bytes:
        # TODO(synk): halo-tile along W for shapes that do not fit VMEM.
        raise ValueError(
            "CausalConv3d tile does not fit the VMEM budget "
            f"({working_set(th)} > {vmem_budget_bytes} bytes)")
    hb = -(-H // th)                        # number of H tiles
    h8 = hb * th
    m = th * w8                             # matmul M per tile

    # Lane-dense im2col stores: group taps so each store spans 128 lanes.
    if Cin < _LANES and _LANES % Cin == 0:
        group = _LANES // Cin
    else:
        group = 1

    # ---- Host glue: causal left pad (+ right pad up to blocked sizes). ----
    x_pad = jnp.pad(x.astype(compute_dtype),
                    ((0, 0), (pad_d, 0), (pad_h, h8 - H),
                     (pad_w, w8 - W), (0, 0)))
    dp, hp = D + pad_d, h8 + pad_h

    # Weights: (Cout, Cin, KD, KH, KW) -> (KD*KH*KW*Cin, Cout_p) in the same
    # (kd, kh, kw, ci) order as the in-kernel im2col packing.
    w_packed = jnp.transpose(weight, (2, 3, 4, 1, 0)).reshape(k_total, Cout)
    w_packed = jnp.pad(w_packed.astype(compute_dtype),
                       ((0, 0), (0, cout_p - Cout)))

    taps = tuple((d_, h_, w_) for d_ in range(KD)
                 for h_ in range(KH) for w_ in range(KW))

    cost = pl.CostEstimate(
        flops=int(2 * N * D * hb * m * k_total * cout_p),
        transcendentals=0,
        bytes_accessed=int(N * D * hb * dspan * (th + pad_h) * wp * Cin * cb
                           + k_total * cout_p * cb
                           + N * D * hb * m * cout_p * ob))

    def build(halo):
        if halo:
            # Exactly the (dspan, th+pad_h) causal window this tile needs,
            # element-offset indexed along D and H (overlapping halo windows).
            x_spec = pl.BlockSpec(
                (1, pl.Element(dspan), pl.Element(th + pad_h), wp, Cin),
                lambda n, d, h: (n, d, h * th, 0, 0))
        else:
            # Fallback: full padded D/H extent per step (more HBM traffic and
            # VMEM, still correct); kernel offsets into it dynamically.
            x_spec = pl.BlockSpec((1, dp, hp, wp, Cin),
                                  lambda n, d, h: (n, 0, 0, 0, 0))
        kernel = functools.partial(
            _causal_conv3d_kernel, taps=taps, dilation=dilation,
            th=th, w8=w8, cin=Cin, group=group, halo=halo)
        return pl.pallas_call(
            kernel,
            out_shape=jax.ShapeDtypeStruct((N, D, h8 * w8, cout_p), out_dtype),
            grid_spec=pltpu.PrefetchScalarGridSpec(
                num_scalar_prefetch=0,
                grid=(N, D, hb),
                in_specs=[
                    x_spec,
                    # Packed weights, grid-constant (fetched once, resident).
                    # TODO(synk): pl.Buffered(1) would halve their residency
                    # on v7x for very large Cin*Cout.
                    pl.BlockSpec((k_total, cout_p), lambda n, d, h: (0, 0)),
                ],
                out_specs=pl.BlockSpec((1, 1, m, cout_p),
                                       lambda n, d, h: (n, d, h, 0)),
                scratch_shapes=[pltpu.VMEM((th, w8, k_total), compute_dtype)],
            ),
            compiler_params=pltpu.CompilerParams(
                dimension_semantics=("parallel", "parallel", "parallel"),
                vmem_limit_bytes=int(vmem_limit_bytes),
            ),
            cost_estimate=cost,
        )

    try:
        out_flat = build(halo=True)(x_pad, w_packed)
    except Exception:
        # Element-offset (halo) BlockSpecs unavailable on this backend/version:
        # fall back to full-extent input blocks (correct, less efficient).
        out_flat = build(halo=False)(x_pad, w_packed)

    out = out_flat.reshape(N, D, h8, w8, cout_p)[:, :, :H, :W, :Cout]
    return out


def causal_conv3d(x, weight, kernel_size, dilation=(1, 1, 1), **kwargs):
    """NCDHW wrapper (PyTorch layout): x (N, Cin, D, H, W) -> (N, Cout, D, H, W).

    Prefer causal_conv3d_ndhwc to avoid the two extra HBM transpose passes.
    """
    x_ndhwc = jnp.transpose(x, (0, 2, 3, 4, 1))
    out = causal_conv3d_ndhwc(x_ndhwc, weight, kernel_size, dilation, **kwargs)
    return jnp.transpose(out, (0, 4, 1, 2, 3))


def _reference(x, weight, kernel_size, dilation, compute_dtype):
    """Pure-JAX reference with the exact PyTorch semantics (symmetric pad, crop)."""
    pads = tuple((kernel_size[i] - 1) * dilation[i] for i in range(3))
    full = jax.lax.conv_general_dilated(
        x.astype(compute_dtype), weight.astype(compute_dtype),
        window_strides=(1, 1, 1),
        padding=[(p, p) for p in pads],
        rhs_dilation=dilation,
        dimension_numbers=("NCDHW", "OIDHW", "NCDHW"),
        preferred_element_type=jnp.float32,
    ).astype(x.dtype)
    pd, ph, pw = pads
    return full[:, :, :-pd, :-ph, :-pw]


if __name__ == "__main__":
    key = jax.random.PRNGKey(0)

    configs = [
        # (N, Cin, Cout, D, H, W, kernel_size, dilation, kwargs, ref_dtype, tol)
        (2, 32, 64, 5, 8, 8, (3, 3, 3), (1, 1, 1),
         dict(compute_dtype=jnp.float32), jnp.float32, 1e-3),
        (1, 16, 8, 6, 5, 6, (2, 3, 3), (2, 1, 1),
         dict(compute_dtype=jnp.bfloat16), jnp.bfloat16, 1e-2),
        # Forces hb > 1 to exercise the H halo-tiling path.
        (1, 16, 32, 4, 24, 8, (2, 2, 2), (1, 1, 1),
         dict(max_rows=64), jnp.float32, 1e-3),
    ]

    for (N, Cin, Cout, D, H, W, ks, dil, kwargs, ref_dt, tol) in configs:
        key, kx, kw = jax.random.split(key, 3)
        x = jax.random.normal(kx, (N, Cin, D, H, W), dtype=jnp.float32)

        # Deterministic init mimicking nn.Conv3d default (uniform +-1/sqrt(fan_in)).
        fan_in = Cin * ks[0] * ks[1] * ks[2]
        bound = 1.0 / math.sqrt(fan_in)
        weight = jax.random.uniform(kw, (Cout, Cin) + ks, dtype=jnp.float32,
                                    minval=-bound, maxval=bound)

        out = causal_conv3d(x, weight, ks, dil, **kwargs)
        out = jax.block_until_ready(out)

        ref = _reference(x, weight, ks, dil, ref_dt)
        assert out.shape == ref.shape == (N, Cout, D, H, W), (out.shape, ref.shape)
        max_err = float(jnp.max(jnp.abs(out - ref)))
        assert jnp.allclose(out, ref, atol=tol, rtol=tol), (ks, dil, max_err)

    print("KERNEL_OK")
</pallas_src>

<mosaic_0001>
module attributes {stable_mosaic.version = 11 : i64} {
  func.func @_causal_conv3d_kernel(%arg0: i32, %arg1: i32, %arg2: i32, %arg3: memref<1x7x10x10x32xf32, #tpu.memory_space<vmem>>, %arg4: memref<864x128xf32, #tpu.memory_space<vmem>>, %arg5: memref<1x1x64x128xf32, #tpu.memory_space<vmem>>, %arg6: memref<8x8x864xf32, #tpu.memory_space<vmem>>) attributes {dimension_semantics = [#tpu.dimension_semantics<parallel>, #tpu.dimension_semantics<parallel>, #tpu.dimension_semantics<parallel>], iteration_bounds = array<i64: 2, 5, 1>, scalar_prefetch = 0 : i64, scratch_operands = 1 : i64, tpu.core_type = #tpu.core_type<tc>, window_params = [{transform_indices = @transform_0, window_bounds = array<i64: 1, 7, 10, 10, 32>}, {pipeline_mode = #tpu.pipeline_mode<synchronous>, transform_indices = @transform_1, window_bounds = array<i64: 864, 128>}, {transform_indices = @transform_2, window_bounds = array<i64: 1, 1, 64, 128>}]} {
    %c8_i32 = arith.constant 8 : i32
    %0 = arith.muli %arg2, %c8_i32 : i32
    %1 = tpu.assume_multiple %0, 8 : i32
    %c0_i32 = arith.constant 0 : i32
    %2 = arith.addi %arg1, %c0_i32 : i32
    %c0_i32_0 = arith.constant 0 : i32
    %3 = arith.addi %1, %c0_i32_0 : i32
    %c0 = arith.constant 0 : index
    %4 = arith.index_cast %2 : i32 to index
    %5 = arith.index_cast %3 : i32 to index
    %c0_1 = arith.constant 0 : index
    %c0_2 = arith.constant 0 : index
    %6 = vector.load %arg3[%c0, %4, %5, %c0_1, %c0_2] : memref<1x7x10x10x32xf32, #tpu.memory_space<vmem>>, vector<1x1x8x8x32xf32>
    %7 = vector.shape_cast %6 : vector<1x1x8x8x32xf32> to vector<1x8x8x32xf32>
    %8 = vector.shape_cast %7 : vector<1x8x8x32xf32> to vector<8x8x32xf32>
    %c0_i32_3 = arith.constant 0 : i32
    %9 = arith.addi %arg1, %c0_i32_3 : i32
    %c0_i32_4 = arith.constant 0 : i32
    %10 = arith.addi %1, %c0_i32_4 : i32
    %c0_5 = arith.constant 0 : index
    %11 = arith.index_cast %9 : i32 to index
    %12 = arith.index_cast %10 : i32 to index
    %c1 = arith.constant 1 : index
    %c0_6 = arith.constant 0 : index
    %13 = vector.load %arg3[%c0_5, %11, %12, %c1, %c0_6] : memref<1x7x10x10x32xf32, #tpu.memory_space<vmem>>, vector<1x1x8x8x32xf32>
    %14 = vector.shape_cast %13 : vector<1x1x8x8x32xf32> to vector<1x8x8x32xf32>
    %15 = vector.shape_cast %14 : vector<1x8x8x32xf32> to vector<8x8x32xf32>
    %c0_i32_7 = arith.constant 0 : i32
    %16 = arith.addi %arg1, %c0_i32_7 : i32
    %c0_i32_8 = arith.constant 0 : i32
    %17 = arith.addi %1, %c0_i32_8 : i32
    %c0_9 = arith.constant 0 : index
    %18 = arith.index_cast %16 : i32 to index
    %19 = arith.index_cast %17 : i32 to index
    %c2 = arith.constant 2 : index
    %c0_10 = arith.constant 0 : index
    %20 = vector.load %arg3[%c0_9, %18, %19, %c2, %c0_10] : memref<1x7x10x10x32xf32, #tpu.memory_space<vmem>>, vector<1x1x8x8x32xf32>
    %21 = vector.shape_cast %20 : vector<1x1x8x8x32xf32> to vector<1x8x8x32xf32>
    %22 = vector.shape_cast %21 : vector<1x8x8x32xf32> to vector<8x8x32xf32>
    %c0_i32_11 = arith.constant 0 : i32
    %23 = arith.addi %arg1, %c0_i32_11 : i32
    %c1_i32 = arith.constant 1 : i32
    %24 = arith.addi %1, %c1_i32 : i32
    %c0_12 = arith.constant 0 : index
    %25 = arith.index_cast %23 : i32 to index
    %26 = arith.index_cast %24 : i32 to index
    %c0_13 = arith.constant 0 : index
    %c0_14 = arith.constant 0 : index
    %27 = vector.load %arg3[%c0_12, %25, %26, %c0_13, %c0_14] : memref<1x7x10x10x32xf32, #tpu.memory_space<vmem>>, vector<1x1x8x8x32xf32>
    %28 = vector.shape_cast %27 : vector<1x1x8x8x32xf32> to vector<1x8x8x32xf32>
    %29 = vector.shape_cast %28 : vector<1x8x8x32xf32> to vector<8x8x32xf32>
    %30 = tpu.concatenate %8, %15, %22, %29 in 2 : vector<8x8x32xf32>, vector<8x8x32xf32>, vector<8x8x32xf32>, vector<8x8x32xf32> -> vector<8x8x128xf32>
    %c0_15 = arith.constant 0 : index
    %c0_16 = arith.constant 0 : index
    %c0_17 = arith.constant 0 : index
    %31 = vector.load %arg6[%c0_15, %c0_16, %c0_17] : memref<8x8x864xf32, #tpu.memory_space<vmem>>, vector<8x8x128xf32>
    tpu.vector_store %arg6[%c0_15, %c0_16, %c0_17], %30 {strides = array<i32>} : memref<8x8x864xf32, #tpu.memory_space<vmem>>, vector<8x8x128xf32>,
    %c0_i32_18 = arith.constant 0 : i32
    %32 = arith.addi %arg1, %c0_i32_18 : i32
    %c1_i32_19 = arith.constant 1 : i32
    %33 = arith.addi %1, %c1_i32_19 : i32
    %c0_20 = arith.constant 0 : index
    %34 = arith.index_cast %32 : i32 to index
    %35 = arith.index_cast %33 : i32 to index
    %c1_21 = arith.constant 1 : index
    %c0_22 = arith.constant 0 : index
    %36 = vector.load %arg3[%c0_20, %34, %35, %c1_21, %c0_22] : memref<1x7x10x10x32xf32, #tpu.memory_space<vmem>>, vector<1x1x8x8x32xf32>
    %37 = vector.shape_cast %36 : vector<1x1x8x8x32xf32> to vector<1x8x8x32xf32>
    %38 = vector.shape_cast %37 : vector<1x8x8x32xf32> to vector<8x8x32xf32>
    %c0_i32_23 = arith.constant 0 : i32
    %39 = arith.addi %arg1, %c0_i32_23 : i32
    %c1_i32_24 = arith.constant 1 : i32
    %40 = arith.addi %1, %c1_i32_24 : i32
    %c0_25 = arith.constant 0 : index
    %41 = arith.index_cast %39 : i32 to index
    %42 = arith.index_cast %40 : i32 to index
    %c2_26 = arith.constant 2 : index
    %c0_27 = arith.constant 0 : index
    %43 = vector.load %arg3[%c0_25, %41, %42, %c2_26, %c0_27] : memref<1x7x10x10x32xf32, #tpu.memory_space<vmem>>, vector<1x1x8x8x32xf32>
    %44 = vector.shape_cast %43 : vector<1x1x8x8x32xf32> to vector<1x8x8x32xf32>
    %45 = vector.shape_cast %44 : vector<1x8x8x32xf32> to vector<8x8x32xf32>
    %c0_i32_28 = arith.constant 0 : i32
    %46 = arith.addi %arg1, %c0_i32_28 : i32
    %c2_i32 = arith.constant 2 : i32
    %47 = arith.addi %1, %c2_i32 : i32
    %c0_29 = arith.constant 0 : index
    %48 = arith.index_cast %46 : i32 to index
    %49 = arith.index_cast %47 : i32 to index
    %c0_30 = arith.constant 0 : index
    %c0_31 = arith.constant 0 : index
    %50 = vector.load %arg3[%c0_29, %48, %49, %c0_30, %c0_31] : memref<1x7x10x10x32xf32, #tpu.memory_space<vmem>>, vector<1x1x8x8x32xf32>
    %51 = vector.shape_cast %50 : vector<1x1x8x8x32xf32> to vector<1x8x8x32xf32>
    %52 = vector.shape_cast %51 : vector<1x8x8x32xf32> to vector<8x8x32xf32>
    %c0_i32_32 = arith.constant 0 : i32
    %53 = arith.addi %arg1, %c0_i32_32 : i32
    %c2_i32_33 = arith.constant 2 : i32
    %54 = arith.addi %1, %c2_i32_33 : i32
    %c0_34 = arith.constant 0 : index
    %55 = arith.index_cast %53 : i32 to index
    %56 = arith.index_cast %54 : i32 to index
    %c1_35 = arith.constant 1 : index
    %c0_36 = arith.constant 0 : index
    %57 = vector.load %arg3[%c0_34, %55, %56, %c1_35, %c0_36] : memref<1x7x10x10x32xf32, #tpu.memory_space<vmem>>, vector<1x1x8x8x32xf32>
    %58 = vector.shape_cast %57 : vector<1x1x8x8x32xf32> to vector<1x8x8x32xf32>
    %59 = vector.shape_cast %58 : vector<1x8x8x32xf32> to vector<8x8x32xf32>
    %60 = tpu.concatenate %38, %45, %52, %59 in 2 : vector<8x8x32xf32>, vector<8x8x32xf32>, vector<8x8x32xf32>, vector<8x8x32xf32> -> vector<8x8x128xf32>
    %c0_37 = arith.constant 0 : index
    %c0_38 = arith.constant 0 : index
    %c128 = arith.constant 128 : index
    %61 = vector.load %arg6[%c0_37, %c0_38, %c128] : memref<8x8x864xf32, #tpu.memory_space<vmem>>, vector<8x8x128xf32>
    tpu.vector_store %arg6[%c0_37, %c0_38, %c128], %60 {strides = array<i32>} : memref<8x8x864xf32, #tpu.memory_space<vmem>>, vector<8x8x128xf32>,
    %c0_i32_39 = arith.constant 0 : i32
    %62 = arith.addi %arg1, %c0_i32_39 : i32
    %c2_i32_40 = arith.constant 2 : i32
    %63 = arith.addi %1, %c2_i32_40 : i32
    %c0_41 = arith.constant 0 : index
    %64 = arith.index_cast %62 : i32 to index
    %65 = arith.index_cast %63 : i32 to index
    %c2_42 = arith.constant 2 : index
    %c0_43 = arith.constant 0 : index
    %66 = vector.load %arg3[%c0_41, %64, %65, %c2_42, %c0_43] : memref<1x7x10x10x32xf32, #tpu.memory_space<vmem>>, vector<1x1x8x8x32xf32>
    %67 = vector.shape_cast %66 : vector<1x1x8x8x32xf32> to vector<1x8x8x32xf32>
    %68 = vector.shape_cast %67 : vector<1x8x8x32xf32> to vector<8x8x32xf32>
    %c1_i32_44 = arith.constant 1 : i32
    %69 = arith.addi %arg1, %c1_i32_44 : i32
    %c0_i32_45 = arith.constant 0 : i32
    %70 = arith.addi %1, %c0_i32_45 : i32
    %c0_46 = arith.constant 0 : index
    %71 = arith.index_cast %69 : i32 to index
    %72 = arith.index_cast %70 : i32 to index
    %c0_47 = arith.constant 0 : index
    %c0_48 = arith.constant 0 : index
    %73 = vector.load %arg3[%c0_46, %71, %72, %c0_47, %c0_48] : memref<1x7x10x10x32xf32, #tpu.memory_space<vmem>>, vector<1x1x8x8x32xf32>
    %74 = vector.shape_cast %73 : vector<1x1x8x8x32xf32> to vector<1x8x8x32xf32>
    %75 = vector.shape_cast %74 : vector<1x8x8x32xf32> to vector<8x8x32xf32>
    %c1_i32_49 = arith.constant 1 : i32
    %76 = arith.addi %arg1, %c1_i32_49 : i32
    %c0_i32_50 = arith.constant 0 : i32
    %77 = arith.addi %1, %c0_i32_50 : i32
    %c0_51 = arith.constant 0 : index
    %78 = arith.index_cast %76 : i32 to index
    %79 = arith.index_cast %77 : i32 to index
    %c1_52 = arith.constant 1 : index
    %c0_53 = arith.constant 0 : index
    %80 = vector.load %arg3[%c0_51, %78, %79, %c1_52, %c0_53] : memref<1x7x10x10x32xf32, #tpu.memory_space<vmem>>, vector<1x1x8x8x32xf32>
    %81 = vector.shape_cast %80 : vector<1x1x8x8x32xf32> to vector<1x8x8x32xf32>
    %82 = vector.shape_cast %81 : vector<1x8x8x32xf32> to vector<8x8x32xf32>
    %c1_i32_54 = arith.constant 1 : i32
    %83 = arith.addi %arg1, %c1_i32_54 : i32
    %c0_i32_55 = arith.constant 0 : i32
    %84 = arith.addi %1, %c0_i32_55 : i32
    %c0_56 = arith.constant 0 : index
    %85 = arith.index_cast %83 : i32 to index
    %86 = arith.index_cast %84 : i32 to index
    %c2_57 = arith.constant 2 : index
    %c0_58 = arith.constant 0 : index
    %87 = vector.load %arg3[%c0_56, %85, %86, %c2_57, %c0_58] : memref<1x7x10x10x32xf32, #tpu.memory_space<vmem>>, vector<1x1x8x8x32xf32>
    %88 = vector.shape_cast %87 : vector<1x1x8x8x32xf32> to vector<1x8x8x32xf32>
    %89 = vector.shape_cast %88 : vector<1x8x8x32xf32> to vector<8x8x32xf32>
    %90 = tpu.concatenate %68, %75, %82, %89 in 2 : vector<8x8x32xf32>, vector<8x8x32xf32>, vector<8x8x32xf32>, vector<8x8x32xf32> -> vector<8x8x128xf32>
    %c0_59 = arith.constant 0 : index
    %c0_60 = arith.constant 0 : index
    %c256 = arith.constant 256 : index
    %91 = vector.load %arg6[%c0_59, %c0_60, %c256] : memref<8x8x864xf32, #tpu.memory_space<vmem>>, vector<8x8x128xf32>
    tpu.vector_store %arg6[%c0_59, %c0_60, %c256], %90 {strides = array<i32>} : memref<8x8x864xf32, #tpu.memory_space<vmem>>, vector<8x8x128xf32>,
    %c1_i32_61 = arith.constant 1 : i32
    %92 = arith.addi %arg1, %c1_i32_61 : i32
    %c1_i32_62 = arith.constant 1 : i32
    %93 = arith.addi %1, %c1_i32_62 : i32
    %c0_63 = arith.constant 0 : index
    %94 = arith.index_cast %92 : i32 to index
    %95 = arith.index_cast %93 : i32 to index
    %c0_64 = arith.constant 0 : index
    %c0_65 = arith.constant 0 : index
    %96 = vector.load %arg3[%c0_63, %94, %95, %c0_64, %c0_65] : memref<1x7x10x10x32xf32, #tpu.memory_space<vmem>>, vector<1x1x8x8x32xf32>
    %97 = vector.shape_cast %96 : vector<1x1x8x8x32xf32> to vector<1x8x8x32xf32>
    %98 = vector.shape_cast %97 : vector<1x8x8x32xf32> to vector<8x8x32xf32>
    %c1_i32_66 = arith.constant 1 : i32
    %99 = arith.addi %arg1, %c1_i32_66 : i32
    %c1_i32_67 = arith.constant 1 : i32
    %100 = arith.addi %1, %c1_i32_67 : i32
    %c0_68 = arith.constant 0 : index
    %101 = arith.index_cast %99 : i32 to index
    %102 = arith.index_cast %100 : i32 to index
    %c1_69 = arith.constant 1 : index
    %c0_70 = arith.constant 0 : index
    %103 = vector.load %arg3[%c0_68, %101, %102, %c1_69, %c0_70] : memref<1x7x10x10x32xf32, #tpu.memory_space<vmem>>, vector<1x1x8x8x32xf32>
    %104 = vector.shape_cast %103 : vector<1x1x8x8x32xf32> to vector<1x8x8x32xf32>
    %105 = vector.shape_cast %104 : vector<1x8x8x32xf32> to vector<8x8x32xf32>
    %c1_i32_71 = arith.constant 1 : i32
    %106 = arith.addi %arg1, %c1_i32_71 : i32
    %c1_i32_72 = arith.constant 1 : i32
    %107 = arith.addi %1, %c1_i32_72 : i32
    %c0_73 = arith.constant 0 : index
    %108 = arith.index_cast %106 : i32 to index
    %109 = arith.index_cast %107 : i32 to index
    %c2_74 = arith.constant 2 : index
    %c0_75 = arith.constant 0 : index
    %110 = vector.load %arg3[%c0_73, %108, %109, %c2_74, %c0_75] : memref<1x7x10x10x32xf32, #tpu.memory_space<vmem>>, vector<1x1x8x8x32xf32>
    %111 = vector.shape_cast %110 : vector<1x1x8x8x32xf32> to vector<1x8x8x32xf32>
    %112 = vector.shape_cast %111 : vector<1x8x8x32xf32> to vector<8x8x32xf32>
    %c1_i32_76 = arith.constant 1 : i32
    %113 = arith.addi %arg1, %c1_i32_76 : i32
    %c2_i32_77 = arith.constant 2 : i32
    %114 = arith.addi %1, %c2_i32_77 : i32
    %c0_78 = arith.constant 0 : index
    %115 = arith.index_cast %113 : i32 to index
    %116 = arith.index_cast %114 : i32 to index
    %c0_79 = arith.constant 0 : index
    %c0_80 = arith.constant 0 : index
    %117 = vector.load %arg3[%c0_78, %115, %116, %c0_79, %c0_80] : memref<1x7x10x10x32xf32, #tpu.memory_space<vmem>>, vector<1x1x8x8x32xf32>
    %118 = vector.shape_cast %117 : vector<1x1x8x8x32xf32> to vector<1x8x8x32xf32>
    %119 = vector.shape_cast %118 : vector<1x8x8x32xf32> to vector<8x8x32xf32>
    %120 = tpu.concatenate %98, %105, %112, %119 in 2 : vector<8x8x32xf32>, vector<8x8x32xf32>, vector<8x8x32xf32>, vector<8x8x32xf32> -> vector<8x8x128xf32>
    %c0_81 = arith.constant 0 : index
    %c0_82 = arith.constant 0 : index
    %c384 = arith.constant 384 : index
    %121 = vector.load %arg6[%c0_81, %c0_82, %c384] : memref<8x8x864xf32, #tpu.memory_space<vmem>>, vector<8x8x128xf32>
    tpu.vector_store %arg6[%c0_81, %c0_82, %c384], %120 {strides = array<i32>} : memref<8x8x864xf32, #tpu.memory_space<vmem>>, vector<8x8x128xf32>,
    %c1_i32_83 = arith.constant 1 : i32
    %122 = arith.addi %arg1, %c1_i32_83 : i32
    %c2_i32_84 = arith.constant 2 : i32
    %123 = arith.addi %1, %c2_i32_84 : i32
    %c0_85 = arith.constant 0 : index
    %124 = arith.index_cast %122 : i32 to index
    %125 = arith.index_cast %123 : i32 to index
    %c1_86 = arith.constant 1 : index
    %c0_87 = arith.constant 0 : index
    %126 = vector.load %arg3[%c0_85, %124, %125, %c1_86, %c0_87] : memref<1x7x10x10x32xf32, #tpu.memory_space<vmem>>, vector<1x1x8x8x32xf32>
    %127 = vector.shape_cast %126 : vector<1x1x8x8x32xf32> to vector<1x8x8x32xf32>
    %128 = vector.shape_cast %127 : vector<1x8x8x32xf32> to vector<8x8x32xf32>
    %c1_i32_88 = arith.constant 1 : i32
    %129 = arith.addi %arg1, %c1_i32_88 : i32
    %c2_i32_89 = arith.constant 2 : i32
    %130 = arith.addi %1, %c2_i32_89 : i32
    %c0_90 = arith.constant 0 : index
    %131 = arith.index_cast %129 : i32 to index
    %132 = arith.index_cast %130 : i32 to index
    %c2_91 = arith.constant 2 : index
    %c0_92 = arith.constant 0 : index
    %133 = vector.load %arg3[%c0_90, %131, %132, %c2_91, %c0_92] : memref<1x7x10x10x32xf32, #tpu.memory_space<vmem>>, vector<1x1x8x8x32xf32>
    %134 = vector.shape_cast %133 : vector<1x1x8x8x32xf32> to vector<1x8x8x32xf32>
    %135 = vector.shape_cast %134 : vector<1x8x8x32xf32> to vector<8x8x32xf32>
    %c2_i32_93 = arith.constant 2 : i32
    %136 = arith.addi %arg1, %c2_i32_93 : i32
    %c0_i32_94 = arith.constant 0 : i32
    %137 = arith.addi %1, %c0_i32_94 : i32
    %c0_95 = arith.constant 0 : index
    %138 = arith.index_cast %136 : i32 to index
    %139 = arith.index_cast %137 : i32 to index
    %c0_96 = arith.constant 0 : index
    %c0_97 = arith.constant 0 : index
    %140 = vector.load %arg3[%c0_95, %138, %139, %c0_96, %c0_97] : memref<1x7x10x10x32xf32, #tpu.memory_space<vmem>>, vector<1x1x8x8x32xf32>
    %141 = vector.shape_cast %140 : vector<1x1x8x8x32xf32> to vector<1x8x8x32xf32>
    %142 = vector.shape_cast %141 : vector<1x8x8x32xf32> to vector<8x8x32xf32>
    %c2_i32_98 = arith.constant 2 : i32
    %143 = arith.addi %arg1, %c2_i32_98 : i32
    %c0_i32_99 = arith.constant 0 : i32
    %144 = arith.addi %1, %c0_i32_99 : i32
    %c0_100 = arith.constant 0 : index
    %145 = arith.index_cast %143 : i32 to index
    %146 = arith.index_cast %144 : i32 to index
    %c1_101 = arith.constant 1 : index
    %c0_102 = arith.constant 0 : index
    %147 = vector.load %arg3[%c0_100, %145, %146, %c1_101, %c0_102] : memref<1x7x10x10x32xf32, #tpu.memory_space<vmem>>, vector<1x1x8x8x32xf32>
    %148 = vector.shape_cast %147 : vector<1x1x8x8x32xf32> to vector<1x8x8x32xf32>
    %149 = vector.shape_cast %148 : vector<1x8x8x32xf32> to vector<8x8x32xf32>
    %150 = tpu.concatenate %128, %135, %142, %149 in 2 : vector<8x8x32xf32>, vector<8x8x32xf32>, vector<8x8x32xf32>, vector<8x8x32xf32> -> vector<8x8x128xf32>
    %c0_103 = arith.constant 0 : index
    %c0_104 = arith.constant 0 : index
    %c512 = arith.constant 512 : index
    %151 = vector.load %arg6[%c0_103, %c0_104, %c512] : memref<8x8x864xf32, #tpu.memory_space<vmem>>, vector<8x8x128xf32>
    tpu.vector_store %arg6[%c0_103, %c0_104, %c512], %150 {strides = array<i32>} : memref<8x8x864xf32, #tpu.memory_space<vmem>>, vector<8x8x128xf32>,
    %c2_i32_105 = arith.constant 2 : i32
    %152 = arith.addi %arg1, %c2_i32_105 : i32
    %c0_i32_106 = arith.constant 0 : i32
    %153 = arith.addi %1, %c0_i32_106 : i32
    %c0_107 = arith.constant 0 : index
    %154 = arith.index_cast %152 : i32 to index
    %155 = arith.index_cast %153 : i32 to index
    %c2_108 = arith.constant 2 : index
    %c0_109 = arith.constant 0 : index
    %156 = vector.load %arg3[%c0_107, %154, %155, %c2_108, %c0_109] : memref<1x7x10x10x32xf32, #tpu.memory_space<vmem>>, vector<1x1x8x8x32xf32>
    %157 = vector.shape_cast %156 : vector<1x1x8x8x32xf32> to vector<1x8x8x32xf32>
    %158 = vector.shape_cast %157 : vector<1x8x8x32xf32> to vector<8x8x32xf32>
    %c2_i32_110 = arith.constant 2 : i32
    %159 = arith.addi %arg1, %c2_i32_110 : i32
    %c1_i32_111 = arith.constant 1 : i32
    %160 = arith.addi %1, %c1_i32_111 : i32
    %c0_112 = arith.constant 0 : index
    %161 = arith.index_cast %159 : i32 to index
    %162 = arith.index_cast %160 : i32 to index
    %c0_113 = arith.constant 0 : index
    %c0_114 = arith.constant 0 : index
    %163 = vector.load %arg3[%c0_112, %161, %162, %c0_113, %c0_114] : memref<1x7x10x10x32xf32, #tpu.memory_space<vmem>>, vector<1x1x8x8x32xf32>
    %164 = vector.shape_cast %163 : vector<1x1x8x8x32xf32> to vector<1x8x8x32xf32>
    %165 = vector.shape_cast %164 : vector<1x8x8x32xf32> to vector<8x8x32xf32>
    %c2_i32_115 = arith.constant 2 : i32
    %166 = arith.addi %arg1, %c2_i32_115 : i32
    %c1_i32_116 = arith.constant 1 : i32
    %167 = arith.addi %1, %c1_i32_116 : i32
    %c0_117 = arith.constant 0 : index
    %168 = arith.index_cast %166 : i32 to index
    %169 = arith.index_cast %167 : i32 to index
    %c1_118 = arith.constant 1 : index
    %c0_119 = arith.constant 0 : index
    %170 = vector.load %arg3[%c0_117, %168, %169, %c1_118, %c0_119] : memref<1x7x10x10x32xf32, #tpu.memory_space<vmem>>, vector<1x1x8x8x32xf32>
    %171 = vector.shape_cast %170 : vector<1x1x8x8x32xf32> to vector<1x8x8x32xf32>
    %172 = vector.shape_cast %171 : vector<1x8x8x32xf32> to vector<8x8x32xf32>
    %c2_i32_120 = arith.constant 2 : i32
    %173 = arith.addi %arg1, %c2_i32_120 : i32
    %c1_i32_121 = arith.constant 1 : i32
    %174 = arith.addi %1, %c1_i32_121 : i32
    %c0_122 = arith.constant 0 : index
    %175 = arith.index_cast %173 : i32 to index
    %176 = arith.index_cast %174 : i32 to index
    %c2_123 = arith.constant 2 : index
    %c0_124 = arith.constant 0 : index
    %177 = vector.load %arg3[%c0_122, %175, %176, %c2_123, %c0_124] : memref<1x7x10x10x32xf32, #tpu.memory_space<vmem>>, vector<1x1x8x8x32xf32>
    %178 = vector.shape_cast %177 : vector<1x1x8x8x32xf32> to vector<1x8x8x32xf32>
    %179 = vector.shape_cast %178 : vector<1x8x8x32xf32> to vector<8x8x32xf32>
    %180 = tpu.concatenate %158, %165, %172, %179 in 2 : vector<8x8x32xf32>, vector<8x8x32xf32>, vector<8x8x32xf32>, vector<8x8x32xf32> -> vector<8x8x128xf32>
    %c0_125 = arith.constant 0 : index
    %c0_126 = arith.constant 0 : index
    %c640 = arith.constant 640 : index
    %181 = vector.load %arg6[%c0_125, %c0_126, %c640] : memref<8x8x864xf32, #tpu.memory_space<vmem>>, vector<8x8x128xf32>
    tpu.vector_store %arg6[%c0_125, %c0_126, %c640], %180 {strides = array<i32>} : memref<8x8x864xf32, #tpu.memory_space<vmem>>, vector<8x8x128xf32>,
    %c2_i32_127 = arith.constant 2 : i32
    %182 = arith.addi %arg1, %c2_i32_127 : i32
    %c2_i32_128 = arith.constant 2 : i32
    %183 = arith.addi %1, %c2_i32_128 : i32
    %c0_129 = arith.constant 0 : index
    %184 = arith.index_cast %182 : i32 to index
    %185 = arith.index_cast %183 : i32 to index
    %c0_130 = arith.constant 0 : index
    %c0_131 = arith.constant 0 : index
    %186 = vector.load %arg3[%c0_129, %184, %185, %c0_130, %c0_131] : memref<1x7x10x10x32xf32, #tpu.memory_space<vmem>>, vector<1x1x8x8x32xf32>
    %187 = vector.shape_cast %186 : vector<1x1x8x8x32xf32> to vector<1x8x8x32xf32>
    %188 = vector.shape_cast %187 : vector<1x8x8x32xf32> to vector<8x8x32xf32>
    %c2_i32_132 = arith.constant 2 : i32
    %189 = arith.addi %arg1, %c2_i32_132 : i32
    %c2_i32_133 = arith.constant 2 : i32
    %190 = arith.addi %1, %c2_i32_133 : i32
    %c0_134 = arith.constant 0 : index
    %191 = arith.index_cast %189 : i32 to index
    %192 = arith.index_cast %190 : i32 to index
    %c1_135 = arith.constant 1 : index
    %c0_136 = arith.constant 0 : index
    %193 = vector.load %arg3[%c0_134, %191, %192, %c1_135, %c0_136] : memref<1x7x10x10x32xf32, #tpu.memory_space<vmem>>, vector<1x1x8x8x32xf32>
    %194 = vector.shape_cast %193 : vector<1x1x8x8x32xf32> to vector<1x8x8x32xf32>
    %195 = vector.shape_cast %194 : vector<1x8x8x32xf32> to vector<8x8x32xf32>
    %c2_i32_137 = arith.constant 2 : i32
    %196 = arith.addi %arg1, %c2_i32_137 : i32
    %c2_i32_138 = arith.constant 2 : i32
    %197 = arith.addi %1, %c2_i32_138 : i32
    %c0_139 = arith.constant 0 : index
    %198 = arith.index_cast %196 : i32 to index
    %199 = arith.index_cast %197 : i32 to index
    %c2_140 = arith.constant 2 : index
    %c0_141 = arith.constant 0 : index
    %200 = vector.load %arg3[%c0_139, %198, %199, %c2_140, %c0_141] : memref<1x7x10x10x32xf32, #tpu.memory_space<vmem>>, vector<1x1x8x8x32xf32>
    %201 = vector.shape_cast %200 : vector<1x1x8x8x32xf32> to vector<1x8x8x32xf32>
    %202 = vector.shape_cast %201 : vector<1x8x8x32xf32> to vector<8x8x32xf32>
    %203 = tpu.concatenate %188, %195, %202 in 2 : vector<8x8x32xf32>, vector<8x8x32xf32>, vector<8x8x32xf32> -> vector<8x8x96xf32>
    %c0_142 = arith.constant 0 : index
    %c0_143 = arith.constant 0 : index
    %c768 = arith.constant 768 : index
    %204 = vector.load %arg6[%c0_142, %c0_143, %c768] : memref<8x8x864xf32, #tpu.memory_space<vmem>>, vector<8x8x96xf32>
    tpu.vector_store %arg6[%c0_142, %c0_143, %c768], %203 {strides = array<i32>} : memref<8x8x864xf32, #tpu.memory_space<vmem>>, vector<8x8x96xf32>,
    %c0_144 = arith.constant 0 : index
    %c0_145 = arith.constant 0 : index
    %c0_146 = arith.constant 0 : index
    %205 = vector.load %arg6[%c0_144, %c0_145, %c0_146] : memref<8x8x864xf32, #tpu.memory_space<vmem>>, vector<8x8x864xf32>
    %206 = vector.shape_cast %205 : vector<8x8x864xf32> to vector<64x864xf32>
    %c0_147 = arith.constant 0 : index
    %c0_148 = arith.constant 0 : index
    %207 = vector.load %arg4[%c0_147, %c0_148] : memref<864x128xf32, #tpu.memory_space<vmem>>, vector<864x128xf32>
    %cst = arith.constant dense<0.000000e+00> : vector<64x128xf32>
    %208 = tpu.matmul %206, %207, %cst {dimension_numbers = #tpu.dot_dimension_numbers<[1], [0], [0], [1], [0, 0, 1, 1], [], []>} : vector<64x864xf32>, vector<864x128xf32>, vector<64x128xf32> -> vector<64x128xf32>
    %c0_149 = arith.constant 0 : index
    %c0_150 = arith.constant 0 : index
    %c0_151 = arith.constant 0 : index
    %c0_152 = arith.constant 0 : index
    %209 = vector.load %arg5[%c0_149, %c0_150, %c0_151, %c0_152] : memref<1x1x64x128xf32, #tpu.memory_space<vmem>>, vector<1x1x64x128xf32>
    %210 = vector.shape_cast %209 : vector<1x1x64x128xf32> to vector<64x128xf32>
    %211 = vector.shape_cast %208 : vector<64x128xf32> to vector<1x1x64x128xf32>
    tpu.vector_store %arg5[%c0_149, %c0_150, %c0_151, %c0_152], %211 {strides = array<i32>} : memref<1x1x64x128xf32, #tpu.memory_space<vmem>>, vector<1x1x64x128xf32>,
    return
  }
  func.func @transform_0(%arg0: i32, %arg1: i32, %arg2: i32) -> (i32, i32, i32, i32, i32) {
    %c0_i32 = arith.constant 0 : i32
    %c0_i32_0 = arith.constant 0 : i32
    %c0_i32_1 = arith.constant 0 : i32
    %c0_i32_2 = arith.constant 0 : i32
    %c0_i32_3 = arith.constant 0 : i32
    return %arg0, %c0_i32, %c0_i32_0, %c0_i32_1, %c0_i32_2 : i32, i32, i32, i32, i32
  }
  func.func @transform_1(%arg0: i32, %arg1: i32, %arg2: i32) -> (i32, i32) {
    %c0_i32 = arith.constant 0 : i32
    %c0_i32_0 = arith.constant 0 : i32
    %c0_i32_1 = arith.constant 0 : i32
    return %c0_i32, %c0_i32_0 : i32, i32
  }
  func.func @transform_2(%arg0: i32, %arg1: i32, %arg2: i32) -> (i32, i32, i32, i32) {
    %c0_i32 = arith.constant 0 : i32
    %c0_i32_0 = arith.constant 0 : i32
    return %arg0, %arg1, %arg2, %c0_i32 : i32, i32, i32, i32
  }
}

</mosaic_0001>

<bundles_post_ra>
// kernel: tpu_custom_call.1
= control target key start
LH: loop header
LB: loop body
LE: loop exit
PB: predicated region body
PF: predicated region fallthrough
CT: control target
= control target key end

     0   :  { %7 = vsyncpa [#allocation4], 0  ;;  %s4008_s0 = inlined_call_operand.vmem [shape: f32[2,7,10,10,32], index: 0, kind: input, shape index: {}]   ;;  %s4009_s1 = inlined_call_operand.vmem [shape: f32[864,128], index: 1, kind: input, shape index: {}]   ;;  %s4010_s2 = inlined_call_operand.hbm [shape: f32[2,5,64,128], index: 2, kind: output, shape index: {}]  }
   0x1   :  { %9 = vsyncpa [#allocation4 + $0x1], 0  ;;  %s2786_s9 = smov 0   ;;  %s2788_s10 = smov 0  }
   0x2   :  { %s2790_s11 = smov 0   ;;  %s2792_s12 = smov 0  }
   0x3   :  { %s2794_s13 = smov 0   ;;  %s2796_s14 = smov 0  }
   0x4   :  { %s2798_s15 = smov 0   ;;  %s2800_s16 = smov 0  }
   0x5 LB: > { %s2035_s17 = sadd.s32 4294967295, %s2763_s16   ;;  %s2036_s18 = sadd.s32 4294967294, %s2763_s16   ;;  %s2763_s16 = sphi %s2800_s16, %s15_s16   ;;  %s2759_s15 = sphi %s2798_s15, %s4019_s15   ;;  %s2755_s14 = sphi %s2796_s14, %s4018_s14   ;;  %s2751_s13 = sphi %s2794_s13, %s4017_s13   ;;  %s2747_s12 = sphi %s2792_s12, %s4016_s12   ;;  %s2743_s11 = sphi %s2790_s11, %s4015_s11   ;;  %s2739_s10 = sphi %s2788_s10, %s4014_s10   ;;  %s2735_s9 = sphi %s2786_s9, %s4013_s9  }
   0x6   : > { %s30_s19 = sadd.s32 1, %s2755_s14  ;;  %s34_s20 = sadd.s32 1, %s2759_s15 }
   0x7   : > { %p32_p0 = scmp.ge.s32.totalorder %s30_s19, 5  ;;  %p102_p1 = scmp.ne.s32.totalorder %s2743_s11, %s2739_s10 }
   0x8   : > { %p103_p2 = scmp.eq.s32.totalorder %s2035_s17, 9  ;;  %p108_p5 = scmp.ne.s32.totalorder %s2739_s10, %s2735_s9 }
   0x9   : > { %s4021_s19 = smov (%p32_p0, %s30_s19), 0  ;;  %s4023_s20 = smov (!%p32_p0, %s34_s20), %s2759_s15 }
   0xa   : > { %s86_s21 = ssub.s32 %s2755_s14, %s4021_s19  ;;  %p2837_p3 = por %p103_p2, %p102_p1 }
   0xb   : > { %p36_p4 = scmp.ge.s32.totalorder %s4023_s20, 2  ;;  %p109_p6 = scmp.eq.s32.totalorder %s2036_s18, 9 }
   0xc   : > { %p2039_p7 = scmp.ge.s32.totalorder %s2763_s16, 1  ;;  %p138_p9 = scmp.lt.s32.totalorder %s2763_s16, 11 }
   0xd   : > { %s4025_s20 = smov (%p36_p4, %s4023_s20), 0  ;;  %p2846_p8 = por %p109_p6, %p108_p5 }
   0xe   : > { %s85_s24 = ssub.s32 %s2759_s15, %s4025_s20  ;;  %s92_s25 = sadd.s32 1, %s2743_s11 }
   0xf   : > { %s87_s26 = sor.u32 %s86_s21, %s85_s24  ;;  %p139_p10 = pnand %p2039_p7, %p138_p9 }
  0x10   : > { %p90_p11 = scmp.eq.s32.totalorder %s87_s26, 0  ;;  %p160_p12 = scmp.lt.s32.totalorder (!%p139_p10), %s2751_s13, 1  ;;  %v1342_v0 = vld [vmem:[%s4009_s1 + $0x80] sm:$0xff] (!%p139_p10)  ;;  %v1343_v1 = vld [vmem:[%s4009_s1 + $0x88] sm:$0xff] (!%p139_p10)  ;;  %v1344_v5 = vld [vmem:[%s4009_s1 + $0x90] sm:$0xff] (!%p139_p10)  ;;  %vm303_vm0 = vcmask (!%p139_p10), 261120  }
  0x11   : > { %142 = sbr.rel (%p139_p10) target bundleno = 702 (0x2be), region = 28  ;;  %v1326_v2 = vld [vmem:[%s4009_s1] sm:$0xff] (!%p139_p10)  ;;  %v2471_v3 = vpack.c.bf16 (!%p139_p10), %v1343_v1, %v1342_v0  ;;  %v1327_v4 = vld [vmem:[%s4009_s1 + $0x8] sm:$0xff] (!%p139_p10)  ;;  %v1345_v6 = vld [vmem:[%s4009_s1 + $0x98] sm:$0xff] (!%p139_p10)  ;;  %s2765_s6 = smov (!%p139_p10), 64   ;;  %vm312_vm1 = vcmask (!%p139_p10), 523264  }
  0x12   : > { %s2855_s27 = scalar_select %p90_p11, %s2743_s11, %s92_s25  }
  0x13   : > { %v2473_v7 = vpack.c.bf16 (!%p139_p10), %v1327_v4, %v1326_v2  ;;  %v2475_v8 = vpack.c.bf16 (!%p139_p10), %v1345_v6, %v1344_v5  ;;  %v1328_v9 = vld [vmem:[%s4009_s1 + $0x10] sm:$0xff] (!%p139_p10)  ;;  %v1329_v10 = vld [vmem:[%s4009_s1 + $0x18] sm:$0xff] (!%p139_p10)  ;;  %s168_s30 = smul.u32 (!%p139_p10), 160, %s2747_s12  ;;  %2472 = vmatprep.subr.bf16.mxu0 (!%p139_p10), %v2471_v3  ;;  %v1346_v11 = vld [vmem:[%s4009_s1 + $0xa0] sm:$0xff] (!%p139_p10)  ;;  %s2767_s21 = smov (!%p139_p10), 96   ;;  %vm321_vm2 = vcmask (!%p139_p10), 785408  }
  0x14   : > { %v1347_v12 = vld [vmem:[%s4009_s1 + $0xa8] sm:$0xff] (!%p139_p10)  ;;  %v2477_v13 = vpack.c.bf16 (!%p139_p10), %v1329_v10, %v1328_v9  ;;  %v1330_v14 = vld [vmem:[%s4009_s1 + $0x20] sm:$0xff] (!%p139_p10)  ;;  %v1348_v17 = vld [vmem:[%s4009_s1 + $0xb0] sm:$0xff] (!%p139_p10)  ;;  %s2768_s3 = smov (!%p139_p10), [#allocation3]  }
  0x15   : > { %2474 = vmatpush3.bf16.msra.mxu0 (!%p139_p10), %v2473_v7  ;;  %v1331_v15 = vld [vmem:[%s4009_s1 + $0x28] sm:$0xff] (!%p139_p10)  ;;  %v2479_v16 = vpack.c.bf16 (!%p139_p10), %v1347_v12, %v1346_v11  ;;  %v1349_v18 = vld [vmem:[%s4009_s1 + $0xb8] sm:$0xff] (!%p139_p10)  ;;  %v1332_v22 = vld [vmem:[%s4009_s1 + $0x30] sm:$0xff] (!%p139_p10) }
  0x16   : > { %2476 = vmatprep.subr.bf16.mxu0 (!%p139_p10), %v2475_v8  ;;  %v2481_v21 = vpack.c.bf16 (!%p139_p10), %v1331_v15, %v1330_v14  ;;  %v1333_v23 = vld [vmem:[%s4009_s1 + $0x38] sm:$0xff] (!%p139_p10)  ;;  %v2483_v26 = vpack.c.bf16 (!%p139_p10), %v1349_v18, %v1348_v17  ;;  %v1350_v27 = vld [vmem:[%s4009_s1 + $0xc0] sm:$0xff] (!%p139_p10)  ;;  %v1351_v28 = vld [vmem:[%s4009_s1 + $0xc8] sm:$0xff] (!%p139_p10) }
  0x17   : > { %v2485_v29 = vpack.c.bf16 (!%p139_p10), %v1333_v23, %v1332_v22  ;;  %v1334_v30 = vld [vmem:[%s4009_s1 + $0x40] sm:$0xff] (!%p139_p10)  ;;  %v1335_v31 = vld [vmem:[%s4009_s1 + $0x48] sm:$0xff] (!%p139_p10)  ;;  %v2487_v34 = vpack.c.bf16 (!%p139_p10), %v1351_v28, %v1350_v27  ;;  %v1352_v35 = vld [vmem:[%s4009_s1 + $0xd0] sm:$0xff] (!%p139_p10) }
  0x18   : > { %s161_s24 = scalar_select %p160_p12, %s2751_s13, 1  ;;  %v1353_v36 = vld [vmem:[%s4009_s1 + $0xd8] sm:$0xff]  ;;  %v2489_v37 = vpack.c.bf16 %v1335_v31, %v1334_v30  ;;  %v1336_v38 = vld [vmem:[%s4009_s1 + $0x50] sm:$0xff]  ;;  %v1354_v45 = vld [vmem:[%s4009_s1 + $0xe0] sm:$0xff] }
  0x19   : > { %2478 = vmatpush3.bf16.msra.mxu0 %v2477_v13  ;;  %v1337_v39 = vld [vmem:[%s4009_s1 + $0x58] sm:$0xff]  ;;  %v2491_v42 = vpack.c.bf16 %v1353_v36, %v1352_v35  ;;  %v1355_v46 = vld [vmem:[%s4009_s1 + $0xe8] sm:$0xff]  ;;  %v1338_v48 = vld [vmem:[%s4009_s1 + $0x60] sm:$0xff] }
  0x1a   : > { %s2591_s7 = smul.u32 1120, %s161_s24  ;;  %2480 = vmatprep.subr.bf16.mxu0 %v2479_v16  ;;  %v2493_v43 = vpack.c.bf16 %v1337_v39, %v1336_v38  ;;  %v2495_v47 = vpack.c.bf16 %v1355_v46, %v1354_v45  ;;  %v1339_v49 = vld [vmem:[%s4009_s1 + $0x68] sm:$0xff]  ;;  %v1356_v50 = vld [vmem:[%s4009_s1 + $0xf0] sm:$0xff]  ;;  %v1357_v52 = vld [vmem:[%s4009_s1 + $0xf8] sm:$0xff]  ;;  %s2673_s24 = sshll.u32 %s2768_s3, 4  ;;  %s2674_s24 = int_to_ptr.vmem [resolvable:$false] %s2673_s24 }
  0x1b   : > { %v2497_v51 = vpack.c.bf16 %v1339_v49, %v1338_v48  ;;  %v1340_v53 = vld [vmem:[%s4009_s1 + $0x70] sm:$0xff]  ;;  %v2499_v55 = vpack.c.bf16 %v1357_v52, %v1356_v50  ;;  %v1341_v56 = vld [vmem:[%s4009_s1 + $0x78] sm:$0xff]  ;;  %v1374_v62 = vld [vmem:[%s4009_s1 + $0x180] sm:$0xff]  ;;  %s2675_s4 = scalar_lea.vmem %s2674_s24, 2048 }
  0x1c   : > { %s164_s28 = scalar_lea.vmem %s4008_s0, %s2591_s7  ;;  %v2501_v57 = vpack.c.bf16 %v1341_v56, %v1340_v53  ;;  %v1375_v63 = vld [vmem:[%s4009_s1 + $0x188] sm:$0xff]  ;;  %v1358_v1 = vld [vmem:[%s4009_s1 + $0x100] sm:$0xff]  ;;  %v1376_v5 = vld [vmem:[%s4009_s1 + $0x190] sm:$0xff]  ;;  %s2243_s7 = sshll.u32 %s2747_s12, 3 }
  0x1d   : > { %s2899_s29 = scalar_lea.vmem %s164_s28, %s168_s30  ;;  %s2766_s30 = smov 32   ;;  %2482 = vmatpush3.bf16.msra.mxu0 %v2481_v21  ;;  %v2503_v0 = vpack.c.bf16 %v1375_v63, %v1374_v62  ;;  %v1359_v2 = vld [vmem:[%s4009_s1 + $0x108] sm:$0xff]  ;;  %v1377_v6 = vld [vmem:[%s4009_s1 + $0x198] sm:$0xff]  ;;  %v1360_v8 = vld [vmem:[%s4009_s1 + $0x110] sm:$0xff] }
  0x1e   : > { %v2908_v19 = vld [vmem:[%s2899_s29 + $0x20] sm:$0xff]  ;;  %v2058_v20 = vld [vmem:[%s2899_s29 + $0x12] sm:$0xff]  ;;  %2484 = vmatprep.subr.bf16.mxu0 %v2483_v26  ;;  %v2505_v3 = vpack.c.bf16 %v1359_v2, %v1358_v1  ;;  %v2507_v7 = vpack.c.bf16 %v1377_v6, %v1376_v5  ;;  %v1379_v13 = vld [vmem:[%s4009_s1 + $0x1a8] sm:$0xff] }
  0x1f   : > { %414 = vrot.lane.b32.xlu1 %v2908_v19, %s2765_s6  ;;  %382 = vrot.lane.b32.xlu0 %v2058_v20, %s2766_s30  ;;  %v187_v24 = vld [vmem:[%s2899_s29 + $0x2] sm:$0xff]  ;;  %v2937_v32 = vld [vmem:[%s2899_s29 + $0x10] sm:$0xff] }
  0x20   : > { %v179_v25 = vld [vmem:[%s2899_s29 + $0x1] sm:$0xff]  ;;  %v2959_v40 = vld [vmem:[%s2899_s29 + $0x11] sm:$0xff]  ;;  %2504 = vmatprep.subr.bf16.mxu1 %v2503_v0 }
  0x21   : > { %v2940_v33 = vld [vmem:[%s2899_s29 + $0x21] sm:$0xff]  ;;  %2486 = vmatpush3.bf16.msra.mxu0 %v2485_v29  ;;  %v2969_v44 = vld [vmem:[%s2899_s29 + $0x30] sm:$0xff]  ;;  %2506 = vmatpush3.bf16.msra.mxu1 %v2505_v3  ;;  %v1361_v9 = vld [vmem:[%s4009_s1 + $0x118] sm:$0xff] }
  0x22   : > { %v2962_v41 = vld [vmem:[%s2899_s29 + $0x22] sm:$0xff]  ;;  %2488 = vmatprep.subr.bf16.mxu0 %v2487_v34  ;;  %v2996_v54 = vld [vmem:[%s2899_s29 + $0x31] sm:$0xff]  ;;  %v2509_v10 = vpack.c.bf16 %v1361_v9, %v1360_v8  ;;  %2508 = vmatprep.subr.bf16.mxu1 %v2507_v7 }
  0x23   : > { %247 = vrot.lane.b32.xlu1 %v187_v24, %s2765_s6  ;;  %215 = vrot.lane.b32.xlu0 %v179_v25, %s2766_s30  ;;  %v3006_v58 = vld [vmem:[%s2899_s29 + $0x32] sm:$0xff]  ;;  %v3013_v59 = vld [vmem:[%s2899_s29 + $0x40] sm:$0xff] }
  0x24   : > { %v3020_v60 = vld [vmem:[%s2899_s29 + $0x41] sm:$0xff]  ;;  %v3043_v4 = vld [vmem:[%s2899_s29 + $0x50] sm:$0xff]  ;;  %v1381_v21 = vld [vmem:[%s4009_s1 + $0x1b8] sm:$0xff] }
  0x25   : > { %2490 = vmatpush3.bf16.msra.mxu0 %v2489_v37  ;;  %v2061_v61 = vld [vmem:[%s2899_s29 + $0x42] sm:$0xff]  ;;  %v3062_v11 = vld [vmem:[%s2899_s29 + $0x51] sm:$0xff]  ;;  %2510 = vmatpush3.bf16.msra.mxu1 %v2509_v10 }
  0x26   : > { %2492 = vmatprep.subr.bf16.mxu0 %v2491_v42  ;;  %v1378_v12 = vld [vmem:[%s4009_s1 + $0x1a0] sm:$0xff]  ;;  %v1363_v16 = vld [vmem:[%s4009_s1 + $0x128] sm:$0xff]  ;;  %v3081_v18 = vld [vmem:[%s2899_s29 + $0x52] sm:$0xff] }
  0x27   : > { %279 = vrot.lane.b32.xlu1 %v2937_v32, %s2767_s21  ;;  %446 = vrot.lane.b32.xlu0 %v2940_v33, %s2767_s21  ;;  %v2511_v14 = vpack.c.bf16 %v1379_v13, %v1378_v12  ;;  %v1362_v15 = vld [vmem:[%s4009_s1 + $0x120] sm:$0xff]  ;;  %v1364_v23 = vld [vmem:[%s4009_s1 + $0x130] sm:$0xff] }
  0x28   : > { %v2513_v17 = vpack.c.bf16 %v1363_v16, %v1362_v15  ;;  %v1365_v24 = vld [vmem:[%s4009_s1 + $0x138] sm:$0xff]  ;;  %v3100_v26 = vld [vmem:[%s2899_s29 + $0x60] sm:$0xff]  ;;  %v1383_v28 = vld [vmem:[%s4009_s1 + $0x1c8] sm:$0xff] }
  0x29   : > { %2494 = vmatpush3.bf16.msra.mxu0 %v2493_v43  ;;  %2512 = vmatprep.subr.bf16.mxu1 %v2511_v14  ;;  %v2517_v25 = vpack.c.bf16 %v1365_v24, %v1364_v23  ;;  %v1382_v27 = vld [vmem:[%s4009_s1 + $0x1c0] sm:$0xff]  ;;  %v1367_v31 = vld [vmem:[%s4009_s1 + $0x148] sm:$0xff]  ;;  %v1384_v36 = vld [vmem:[%s4009_s1 + $0x1d0] sm:$0xff] }
  0x2a   : > { %2496 = vmatprep.subr.bf16.mxu0 %v2495_v47  ;;  %2514 = vmatpush3.bf16.msra.mxu1 %v2513_v17  ;;  %v2519_v29 = vpack.c.bf16 %v1383_v28, %v1382_v27  ;;  %v1366_v30 = vld [vmem:[%s4009_s1 + $0x140] sm:$0xff]  ;;  %v1385_v37 = vld [vmem:[%s4009_s1 + $0x1d8] sm:$0xff]  ;;  %v1368_v39 = vld [vmem:[%s4009_s1 + $0x150] sm:$0xff] }
  0x2b   : > { %217 = vrot.lane.b32.xlu1 %v2959_v40, %s2766_s30  ;;  %384 = vrot.lane.b32.xlu0 %v2962_v41, %s2766_s30  ;;  %v2521_v34 = vpack.c.bf16 %v1367_v31, %v1366_v30  ;;  %v3118_v35 = vld [vmem:[%s2899_s29 + $0x61] sm:$0xff]  ;;  %v2523_v38 = vpack.c.bf16 %v1385_v37, %v1384_v36  ;;  %v1369_v42 = vld [vmem:[%s4009_s1 + $0x158] sm:$0xff] }
  0x2c   : > { %v2525_v43 = vpack.c.bf16 %v1369_v42, %v1368_v39  ;;  %v2122_v45 = vld [vmem:[%s2899_s29 + $0xb1] sm:$0xff]  ;;  %v2063_v46 = vld [vmem:[%s2899_s29 + $0x62] sm:$0xff] }
  0x2d   : > { %2498 = vmatpush3.bf16.msra.mxu0 %v2497_v51  ;;  %v1386_v47 = vld [vmem:[%s4009_s1 + $0x1e0] sm:$0xff]  ;;  %v1387_v48 = vld [vmem:[%s4009_s1 + $0x1e8] sm:$0xff]  ;;  %v3153_v53 = vld [vmem:[%s2899_s29 + $0x70] sm:$0xff] }
  0x2e   : > { %2500 = vmatprep.subr.bf16.mxu0 %v2499_v55  ;;  %v2527_v49 = vpack.c.bf16 %v1387_v48, %v1386_v47  ;;  %v1370_v50 = vld [vmem:[%s4009_s1 + $0x160] sm:$0xff]  ;;  %v1371_v51 = vld [vmem:[%s4009_s1 + $0x168] sm:$0xff]  ;;  %v1388_v55 = vld [vmem:[%s4009_s1 + $0x1f0] sm:$0xff] }
  0x2f   : > { %249 = vrot.lane.b32.xlu1 %v2058_v20, %s2765_s6  ;;  %416 = vrot.lane.b32.xlu0 %v2969_v44, %s2765_s6  ;;  %v1380_v20 = vld [vmem:[%s4009_s1 + $0x1b0] sm:$0xff]  ;;  %v2529_v52 = vpack.c.bf16 %v1371_v51, %v1370_v50  ;;  %v1389_v56 = vld [vmem:[%s4009_s1 + $0x1f8] sm:$0xff] }
  0x30   : > { %v2515_v22 = vpack.c.bf16 %v1381_v21, %v1380_v20  ;;  %v1373_v62 = vld [vmem:[%s4009_s1 + $0x178] sm:$0xff]  ;;  %v2090_v1 = vld [vmem:[%s2899_s29 + $0xa0] sm:$0xff]  ;;  %v3208_v12 = vld [vmem:[%s2899_s29 + $0xb0] sm:$0xff] }
  0x31   : > { %2502 = vmatpush3.bf16.msra.mxu0 %v2501_v57  ;;  %v2531_v57 = vpack.c.bf16 %v1389_v56, %v1388_v55  ;;  %v2130_v0 = vld [vmem:[%s2899_s29 + $0xb2] sm:$0xff]  ;;  %v3183_v3 = vld [vmem:[%s2899_s29 + $0xc0] sm:$0xff]  ;;  %v1391_v36 = vld [vmem:[%s4009_s1 + $0x208] sm:$0xff] }
  0x32   : > { %2516 = vmatprep.subr.bf16.mxu1 %v2515_v22  ;;  %v3176_v2 = vld [vmem:[%s2899_s29 + $0x71] sm:$0xff]  ;;  %v2098_v5 = vld [vmem:[%s2899_s29 + $0xa1] sm:$0xff] }
  0x33   : > { %281 = vrot.lane.b32.xlu1 %v2908_v19, %s2767_s21  ;;  %448 = vrot.lane.b32.xlu0 %v2996_v54, %s2767_s21  ;;  %v2106_v6 = vld [vmem:[%s2899_s29 + $0xa2] sm:$0xff]  ;;  %v2064_v8 = vld [vmem:[%s2899_s29 + $0x72] sm:$0xff] }
  0x34   : > { %2518 = vmatpush3.bf16.msra.mxu1 %v2517_v25  ;;  %v2123_v7 = vld [vmem:[%s2899_s29 + $0xc1] sm:$0xff]  ;;  %v3221_v14 = vld [vmem:[%s2899_s29 + $0xd0] sm:$0xff]  ;;  %v1393_v50 = vld [vmem:[%s4009_s1 + $0x218] sm:$0xff] }
  0x35   : > { %2520 = vmatprep.subr.bf16.mxu1 %v2519_v29  ;;  %v3198_v9 = vld [vmem:[%s2899_s29 + $0x80] sm:$0xff]  ;;  %v3230_v15 = vld [vmem:[%s2899_s29 + $0xd1] sm:$0xff] }
  0x36   : > { %v3205_v10 = vld [vmem:[%s2899_s29 + $0xc2] sm:$0xff]  ;;  %v2073_v21 = vld [vmem:[%s2899_s29 + $0x90] sm:$0xff] }
  0x37   : > { %219 = vrot.lane.b32.xlu1 %v2940_v33, %s2766_s30  ;;  %386 = vrot.lane.b32.xlu0 %v3006_v58, %s2766_s30  ;;  %v3215_v13 = vld [vmem:[%s2899_s29 + $0x81] sm:$0xff]  ;;  %v3247_v22 = vld [vmem:[%s2899_s29 + $0xd2] sm:$0xff] }
  0x38   : > { %2522 = vmatpush3.bf16.msra.mxu1 %v2521_v34  ;;  %v2065_v16 = vld [vmem:[%s2899_s29 + $0x82] sm:$0xff]  ;;  %v2081_v27 = vld [vmem:[%s2899_s29 + $0x91] sm:$0xff] }
  0x39   : > { %2524 = vmatprep.subr.bf16.mxu1 %v2523_v38  ;;  %v1406_v17 = vld [vmem:[%s4009_s1 + $0x280] sm:$0xff] }
  0x3a   : > { %v171_v25 = vld [vmem:[%s2899_s29] sm:$0xff] }
  0x3b   : > { %251 = vrot.lane.b32.xlu1 %v2962_v41, %s2765_s6  ;;  %418 = vrot.lane.b32.xlu0 %v3013_v59, %s2765_s6  ;;  %v1390_v34 = vld [vmem:[%s4009_s1 + $0x200] sm:$0xff] }
  0x3c   : > { %2526 = vmatpush3.bf16.msra.mxu1 %v2525_v43  ;;  %v3267_v37 = vld [vmem:[%s2899_s29 + $0xe0] sm:$0xff]  ;;  %v1408_v43 = vld [vmem:[%s4009_s1 + $0x290] sm:$0xff]  ;;  %v2537_v48 = vpack.c.bf16 %v1391_v36, %v1390_v34 }
  0x3d   : > { %2528 = vmatprep.subr.bf16.mxu1 %v2527_v49  ;;  %v1392_v49 = vld [vmem:[%s4009_s1 + $0x210] sm:$0xff]  ;;  %v1410_v56 = vld [vmem:[%s4009_s1 + $0x2a0] sm:$0xff] }
  0x3e   : > { %v1398_v36 = vld [vmem:[%s4009_s1 + $0x240] sm:$0xff] }
  0x3f   : > { %283 = vrot.lane.b32.xlu1 %v2969_v44, %s2767_s21  ;;  %450 = vrot.lane.b32.xlu0 %v3020_v60, %s2767_s21 }
  0x40   : > { %2530 = vmatpush3.bf16.msra.mxu1 %v2529_v52 }
  0x41   : > { %2532 = vmatprep.subr.bf16.mxu1 %v2531_v57  ;;  %v1411_v57 = vld [vmem:[%s4009_s1 + $0x2a8] sm:$0xff] }
  0x43   : > { %221 = vrot.lane.b32.xlu1 %v2996_v54, %s2766_s30  ;;  %388 = vrot.lane.b32.xlu0 %v2061_v61, %s2766_s30 }
  0x47   : > { %253 = vrot.lane.b32.xlu1 %v3006_v58, %s2765_s6  ;;  %420 = vrot.lane.b32.xlu0 %v3043_v4, %s2765_s6 }
  0x4b   : > { %285 = vrot.lane.b32.xlu1 %v3013_v59, %s2767_s21  ;;  %452 = vrot.lane.b32.xlu0 %v3062_v11, %s2767_s21 }
  0x4f   : > { %223 = vrot.lane.b32.xlu1 %v3020_v60, %s2766_s30  ;;  %390 = vrot.lane.b32.xlu0 %v3081_v18, %s2766_s30 }
  0x53   : > { %255 = vrot.lane.b32.xlu1 %v2061_v61, %s2765_s6  ;;  %422 = vrot.lane.b32.xlu0 %v3100_v26, %s2765_s6  ;;  %v1372_v61 = vld [vmem:[%s4009_s1 + $0x170] sm:$0xff] }
  0x54   : > { %v2533_v63 = vpack.c.bf16 %v1373_v62, %v1372_v61  ;;  %v2541_v61 = vpack.c.bf16 %v1393_v50, %v1392_v49  ;;  %v1394_v62 = vld [vmem:[%s4009_s1 + $0x220] sm:$0xff]  ;;  %v1401_v49 = vld [vmem:[%s4009_s1 + $0x258] sm:$0xff]  ;;  %v3373_v50 = vld [vmem:[%s2899_s29 + $0xf0] sm:$0xff] }
  0x56   : > { %2534 = vmatpush3.bf16.msra.mxu1 %v2533_v63  ;;  %v1395_v63 = vld [vmem:[%s4009_s1 + $0x228] sm:$0xff] }
  0x57   : > { %287 = vrot.lane.b32.xlu1 %v3043_v4, %s2767_s21  ;;  %454 = vrot.lane.b32.xlu0 %v3118_v35, %s2767_s21 }
  0x5b   : > { %710 = vrot.lane.b32.xlu1 %v2122_v45, %s2766_s30  ;;  %392 = vrot.lane.b32.xlu0 %v2063_v46, %s2766_s30 }
  0x5f   : > { %424 = vrot.lane.b32.xlu1 %v3153_v53, %s2765_s6  ;;  %225 = vrot.lane.b32.xlu0 %v3062_v11, %s2766_s30 }
  0x63   : > { %742 = vrot.lane.b32.xlu1 %v2130_v0, %s2765_s6  ;;  %546 = vrot.lane.b32.xlu0 %v2090_v1, %s2766_s30  ;;  %v3308_v1 = vld [vmem:[%s2899_s29 + $0xe1] sm:$0xff] }
  0x67   : > { %456 = vrot.lane.b32.xlu1 %v3176_v2, %s2767_s21  ;;  %257 = vrot.lane.b32.xlu0 %v3081_v18, %s2765_s6  ;;  %v1407_v18 = vld [vmem:[%s4009_s1 + $0x288] sm:$0xff] }
  0x68   : > { %v2535_v20 = vpack.c.bf16 %v1407_v18, %v1406_v17  ;;  %v1396_v17 = vld [vmem:[%s4009_s1 + $0x230] sm:$0xff]  ;;  %v1397_v18 = vld [vmem:[%s4009_s1 + $0x238] sm:$0xff] }
  0x69   : > { %v2549_v34 = vpack.c.bf16 %v1397_v18, %v1396_v17  ;;  %v1420_v18 = vld [vmem:[%s4009_s1 + $0x2f0] sm:$0xff] }
  0x6a   : > { %2536 = vmatprep.subr.bf16.mxu0 %v2535_v20 }
  0x6b   : > { %774 = vrot.lane.b32.xlu1 %v3183_v3, %s2767_s21  ;;  %578 = vrot.lane.b32.xlu0 %v2098_v5, %s2765_s6  ;;  %v2543_v5 = vpack.c.bf16 %v1411_v57, %v1410_v56  ;;  %v1419_v56 = vld [vmem:[%s4009_s1 + $0x2e8] sm:$0xff] }
  0x6f   : > { %610 = vrot.lane.b32.xlu1 %v2106_v6, %s2767_s21  ;;  %289 = vrot.lane.b32.xlu0 %v3100_v26, %s2767_s21 }
  0x73   : > { %712 = vrot.lane.b32.xlu1 %v2123_v7, %s2766_s30  ;;  %394 = vrot.lane.b32.xlu0 %v2064_v8, %s2766_s30 }
  0x77   : > { %426 = vrot.lane.b32.xlu1 %v3198_v9, %s2765_s6  ;;  %227 = vrot.lane.b32.xlu0 %v3118_v35, %s2766_s30 }
  0x7b   : > { %744 = vrot.lane.b32.xlu1 %v3205_v10, %s2765_s6  ;;  %548 = vrot.lane.b32.xlu0 %v3208_v12, %s2766_s30 }
  0x7f   : > { %458 = vrot.lane.b32.xlu1 %v3215_v13, %s2767_s21  ;;  %259 = vrot.lane.b32.xlu0 %v2063_v46, %s2765_s6 }
  0x83   : > { %776 = vrot.lane.b32.xlu1 %v3221_v14, %s2767_s21  ;;  %580 = vrot.lane.b32.xlu0 %v2122_v45, %s2765_s6  ;;  %v1409_v45 = vld [vmem:[%s4009_s1 + $0x298] sm:$0xff] }
  0x84   : > { %v2539_v51 = vpack.c.bf16 %v1409_v45, %v1408_v43  ;;  %v1416_v45 = vld [vmem:[%s4009_s1 + $0x2d0] sm:$0xff] }
  0x87   : > { %612 = vrot.lane.b32.xlu1 %v2130_v0, %s2767_s21  ;;  %291 = vrot.lane.b32.xlu0 %v3153_v53, %s2767_s21  ;;  %v3305_v0 = vld [vmem:[%s2899_s29 + $0x150] sm:$0xff] }
  0x8b   : > { %714 = vrot.lane.b32.xlu1 %v3230_v15, %s2766_s30  ;;  %396 = vrot.lane.b32.xlu0 %v2065_v16, %s2766_s30  ;;  %v2545_v16 = vpack.c.bf16 %v1395_v63, %v1394_v62  ;;  %v1403_v62 = vld [vmem:[%s4009_s1 + $0x268] sm:$0xff] }
  0x8f   : > { %428 = vrot.lane.b32.xlu1 %v2073_v21, %s2765_s6  ;;  %229 = vrot.lane.b32.xlu0 %v3176_v2, %s2766_s30 }
  0x91   : > { %v415_v23 = vpop.permute.xlu1 %414  ;;  %v383_v24 = vpop.permute.xlu0 %382 }
  0x92   : > { %v470_v30 = vsel %vm303_vm0, %v2959_v40, %v383_v24 }
  0x93   : > { %746 = vrot.lane.b32.xlu1 %v3247_v22, %s2765_s6  ;;  %550 = vrot.lane.b32.xlu0 %v3183_v3, %s2766_s30  ;;  %v478_v39 = vsel %vm312_vm1, %v470_v30, %v415_v23  ;;  %v3331_v23 = vld [vmem:[%s2899_s29 + $0xe2] sm:$0xff] }
  0x94   : > { %v1414_v30 = vld [vmem:[%s4009_s1 + $0x2c0] sm:$0xff] }
  0x95   : > { %v248_v28 = vpop.permute.xlu1 %247  ;;  %v216_v29 = vpop.permute.xlu0 %215 }
  0x96   : > { %v304_v31 = vsel %vm303_vm0, %v171_v25, %v216_v29 }
  0x97   : > { %460 = vrot.lane.b32.xlu1 %v2081_v27, %s2767_s21  ;;  %261 = vrot.lane.b32.xlu0 %v2064_v8, %s2765_s6  ;;  %v313_v40 = vsel %vm312_vm1, %v304_v31, %v248_v28  ;;  %v1412_v8 = vld [vmem:[%s4009_s1 + $0x2b0] sm:$0xff] }
  0x99   : > { %v280_v38 = vpop.permute.xlu1 %279  ;;  %v447_v42 = vpop.permute.xlu0 %446 }
  0x9a   : > { %v322_v46 = vsel %vm321_vm2, %v313_v40, %v280_v38  ;;  %v486_v47 = vsel %vm321_vm2, %v478_v39, %v447_v42  ;;  %v1399_v38 = vld [vmem:[%s4009_s1 + $0x248] sm:$0xff]  ;;  %v3354_v40 = vld [vmem:[%s2899_s29 + $0x151] sm:$0xff] }
  0x9b   : > { %778 = vrot.lane.b32.xlu1 %v3267_v37, %s2767_s21  ;;  %582 = vrot.lane.b32.xlu0 %v2123_v7, %s2765_s6 }
  0x9c   : > { %1522 = vmatprep.mubr.f32.mxu0 %v486_v47  ;;  %v2553_v47 = vpack.c.bf16 %v1399_v38, %v1398_v36 }
  0x9d   : > { %v218_v52 = vpop.permute.xlu1 %217  ;;  %v385_v55 = vpop.permute.xlu0 %384  ;;  %1523 = vmatmul.mubr.f32.vlgmr.msra.gmra.mrb[0].mxu0 %v322_v46  ;;  %v1417_v46 = vld [vmem:[%s4009_s1 + $0x2d8] sm:$0xff] }
  0x9e   : > { %2538 = vmatpush3.bf16.msra.mxu0 %v2537_v48  ;;  %v305_v20 = vsel %vm303_vm0, %v2937_v32, %v218_v52  ;;  %v471_v21 = vsel %vm303_vm0, %v2940_v33, %v385_v55  ;;  %v1415_v32 = vld [vmem:[%s4009_s1 + $0x2c8] sm:$0xff]  ;;  %v1400_v48 = vld [vmem:[%s4009_s1 + $0x250] sm:$0xff] }
  0x9f   : > { %614 = vrot.lane.b32.xlu1 %v3205_v10, %s2767_s21  ;;  %293 = vrot.lane.b32.xlu0 %v3198_v9, %s2767_s21  ;;  %v1413_v9 = vld [vmem:[%s4009_s1 + $0x2b8] sm:$0xff]  ;;  %v2551_v39 = vpack.c.bf16 %v1415_v32, %v1414_v30  ;;  %v2557_v57 = vpack.c.bf16 %v1401_v49, %v1400_v48 }
  0xa0   : > { %2540 = vmatprep.subr.bf16.mxu0 %v2539_v51  ;;  %v2547_v24 = vpack.c.bf16 %v1413_v9, %v1412_v8  ;;  %v2555_v51 = vpack.c.bf16 %v1417_v46, %v1416_v45 }
  0xa1   : > { %v250_v6 = vpop.permute.xlu1 %249  ;;  %v417_v7 = vpop.permute.xlu0 %416 }
  0xa2   : > { %2542 = vmatpush3.bf16.msra.mxu0 %v2541_v61  ;;  %v314_v25 = vsel %vm312_vm1, %v305_v20, %v250_v6  ;;  %v479_v27 = vsel %vm312_vm1, %v471_v21, %v417_v7  ;;  %v1402_v61 = vld [vmem:[%s4009_s1 + $0x260] sm:$0xff]  ;;  %v3396_v6 = vld [vmem:[%s2899_s29 + $0x152] sm:$0xff] }
  0xa3   : > { %1036 = vrot.lane.b32.xlu1 %v3305_v0, %s2766_s30  ;;  %716 = vrot.lane.b32.xlu0 %v3308_v1, %s2766_s30  ;;  %v2162_v7 = vld [vmem:[%s2899_s29 + $0x140] sm:$0xff]  ;;  %v2561_v21 = vpack.c.bf16 %v1403_v62, %v1402_v61 }
  0xa4   : > { %2544 = vmatprep.subr.bf16.mxu0 %v2543_v5  ;;  %v3466_v61 = vld [vmem:[%s2899_s29 + $0x162] sm:$0xff] }
  0xa5   : > { %v282_v28 = vpop.permute.xlu1 %281  ;;  %v449_v29 = vpop.permute.xlu0 %448 }
  0xa6   : > { %v323_v33 = vsel %vm321_vm2, %v314_v25, %v282_v28  ;;  %v487_v31 = vsel %vm321_vm2, %v479_v27, %v449_v29  ;;  %2546 = vmatpush3.bf16.msra.mxu0 %v2545_v16  ;;  %v1405_v25 = vld [vmem:[%s4009_s1 + $0x278] sm:$0xff]  ;;  %v2170_v27 = vld [vmem:[%s2899_s29 + $0x141] sm:$0xff] }
  0xa7   : > { %748 = vrot.lane.b32.xlu1 %v3331_v23, %s2765_s6  ;;  %552 = vrot.lane.b32.xlu0 %v3221_v14, %s2766_s30 }
  0xa8   : > { %1527 = vmatprep.mubr.f32.mxu0 %v487_v31  ;;  %2548 = vmatprep.subr.bf16.mxu0 %v2547_v24  ;;  %v1404_v24 = vld [vmem:[%s4009_s1 + $0x270] sm:$0xff] }
  0xa9   : > { %v220_v42 = vpop.permute.xlu1 %219  ;;  %v387_v43 = vpop.permute.xlu0 %386  ;;  %1528 = vmatmul.mubr.f32.gmra.mrb[2].mxu0 %v323_v33  ;;  %v2565_v32 = vpack.c.bf16 %v1405_v25, %v1404_v24  ;;  %v3423_v33 = vld [vmem:[%s2899_s29 + $0x160] sm:$0xff]  ;;  %v3426_v31 = vld [vmem:[%s2899_s29 + $0xf1] sm:$0xff] }
  0xaa   : > { %2550 = vmatpush3.bf16.msra.mxu0 %v2549_v34  ;;  %v306_v63 = vsel %vm303_vm0, %v2908_v19, %v220_v42  ;;  %v472_v5 = vsel %vm303_vm0, %v2996_v54, %v387_v43  ;;  %v1421_v19 = vld [vmem:[%s4009_s1 + $0x2f8] sm:$0xff] }
  0xab   : > { %1068 = vrot.lane.b32.xlu1 %v3354_v40, %s2765_s6  ;;  %874 = vrot.lane.b32.xlu0 %v3205_v10, %s2766_s30  ;;  %v1418_v10 = vld [vmem:[%s4009_s1 + $0x2e0] sm:$0xff]  ;;  %v2563_v28 = vpack.c.bf16 %v1421_v19, %v1420_v18  ;;  %v3437_v42 = vld [vmem:[%s2899_s29 + $0xf2] sm:$0xff] }
  0xac   : > { %2552 = vmatprep.subr.bf16.mxu0 %v2551_v39  ;;  %v3500_v19 = vld [vmem:[%s2899_s29 + $0x171] sm:$0xff] }
  0xad   : > { %v252_v52 = vpop.permute.xlu1 %251  ;;  %v419_v55 = vpop.permute.xlu0 %418 }
  0xae   : > { %2554 = vmatpush3.bf16.msra.mxu0 %v2553_v47  ;;  %v315_v8 = vsel %vm312_vm1, %v306_v63, %v252_v52  ;;  %v480_v9 = vsel %vm312_vm1, %v472_v5, %v419_v55  ;;  %v3455_v52 = vld [vmem:[%s2899_s29 + $0x100] sm:$0xff] }
  0xaf   : > { %780 = vrot.lane.b32.xlu1 %v3373_v50, %s2767_s21  ;;  %584 = vrot.lane.b32.xlu0 %v3230_v15, %s2765_s6  ;;  %v2559_v15 = vpack.c.bf16 %v1419_v56, %v1418_v10 }
  0xb0   : > { %2556 = vmatprep.subr.bf16.mxu0 %v2555_v51 }
  0xb1   : > { %v284_v16 = vpop.permute.xlu1 %283  ;;  %v451_v17 = vpop.permute.xlu0 %450 }
  0xb2   : > { %v324_v54 = vsel %vm321_vm2, %v315_v8, %v284_v16  ;;  %v488_v20 = vsel %vm321_vm2, %v480_v9, %v451_v17  ;;  %2558 = vmatpush3.bf16.msra.mxu0 %v2557_v57  ;;  %v3484_v8 = vld [vmem:[%s2899_s29 + $0x101] sm:$0xff] }
  0xb3   : > { %1100 = vrot.lane.b32.xlu1 %v3396_v6, %s2767_s21  ;;  %906 = vrot.lane.b32.xlu0 %v2162_v7, %s2765_s6 }
  0xb4   : > { %1532 = vmatprep.mubr.f32.mxu0 %v488_v20  ;;  %2560 = vmatprep.subr.bf16.mxu0 %v2559_v15  ;;  %v3481_v15 = vld [vmem:[%s2899_s29 + $0x170] sm:$0xff] }
  0xb5   : > { %v222_v29 = vpop.permute.xlu1 %221  ;;  %v389_v30 = vpop.permute.xlu0 %388  ;;  %1533 = vmatmul.mubr.f32.gmra.mrb[4].mxu0 %v324_v54 }
  0xb6   : > { %2562 = vmatpush3.bf16.msra.mxu0 %v2561_v21  ;;  %v307_v38 = vsel %vm303_vm0, %v2969_v44, %v222_v29  ;;  %v473_v39 = vsel %vm303_vm0, %v3020_v60, %v389_v30  ;;  %v3448_v44 = vld [vmem:[%s2899_s29 + $0x161] sm:$0xff] }
  0xb7   : > { %938 = vrot.lane.b32.xlu1 %v2170_v27, %s2767_s21  ;;  %616 = vrot.lane.b32.xlu0 %v3247_v22, %s2767_s21  ;;  %v3511_v27 = vld [vmem:[%s2899_s29 + $0x110] sm:$0xff] }
  0xb8   : > { %2564 = vmatprep.subr.bf16.mxu0 %v2563_v28 }
  0xb9   : > { %v254_v34 = vpop.permute.xlu1 %253  ;;  %v421_v36 = vpop.permute.xlu0 %420 }
  0xba   : > { %2566 = vmatpush3.bf16.msra.mxu0 %v2565_v32  ;;  %v316_v43 = vsel %vm312_vm1, %v307_v38, %v254_v34  ;;  %v481_v45 = vsel %vm312_vm1, %v473_v39, %v421_v36  ;;  %v3524_v32 = vld [vmem:[%s2899_s29 + $0x172] sm:$0xff] }
  0xbb   : > { %1038 = vrot.lane.b32.xlu1 %v3423_v33, %s2766_s30  ;;  %718 = vrot.lane.b32.xlu0 %v3426_v31, %s2766_s30 }
  0xbd   : > { %v286_v46 = vpop.permute.xlu1 %285  ;;  %v453_v47 = vpop.permute.xlu0 %452 }
  0xbe   : > { %v325_v48 = vsel %vm321_vm2, %v316_v43, %v286_v46  ;;  %v489_v49 = vsel %vm321_vm2, %v481_v45, %v453_v47  ;;  %v3539_v45 = vld [vmem:[%s2899_s29 + $0x180] sm:$0xff]  ;;  %v3542_v46 = vld [vmem:[%s2899_s29 + $0x111] sm:$0xff] }
  0xbf   : > { %750 = vrot.lane.b32.xlu1 %v3437_v42, %s2765_s6  ;;  %554 = vrot.lane.b32.xlu0 %v3267_v37, %s2766_s30 }
  0xc0   : > { %1537 = vmatprep.mubr.f32.mxu0 %v489_v49 }
  0xc1   : > { %v224_v60 = vpop.permute.xlu1 %223  ;;  %v391_v51 = vpop.permute.xlu0 %390  ;;  %1538 = vmatmul.mubr.f32.gmra.mrb[6].mxu0 %v325_v48 }
  0xc2   : > { %v308_v56 = vsel %vm303_vm0, %v3013_v59, %v224_v60  ;;  %v474_v57 = vsel %vm303_vm0, %v3062_v11, %v391_v51 }
  0xc3   : > { %1070 = vrot.lane.b32.xlu1 %v3448_v44, %s2765_s6  ;;  %876 = vrot.lane.b32.xlu0 %v3247_v22, %s2766_s30 }
  0xc5   : > { %v256_v55 = vpop.permute.xlu1 %255  ;;  %v423_v10 = vpop.permute.xlu0 %422 }
  0xc6   : > { %v317_v22 = vsel %vm312_vm1, %v308_v56, %v256_v55  ;;  %v482_v62 = vsel %vm312_vm1, %v474_v57, %v423_v10  ;;  %v3558_v55 = vld [vmem:[%s2899_s29 + $0x181] sm:$0xff] }
  0xc7   : > { %782 = vrot.lane.b32.xlu1 %v3455_v52, %s2767_s21  ;;  %586 = vrot.lane.b32.xlu0 %v3308_v1, %s2765_s6 }
  0xc9   : > { %v288_v63 = vpop.permute.xlu1 %287  ;;  %v455_v5 = vpop.permute.xlu0 %454 }
  0xca   : > { %v326_v7 = vsel %vm321_vm2, %v317_v22, %v288_v63  ;;  %v490_v1 = vsel %vm321_vm2, %v482_v62, %v455_v5  ;;  %v3569_v63 = vld [vmem:[%s2899_s29 + $0x120] sm:$0xff] }
  0xcb   : > { %1102 = vrot.lane.b32.xlu1 %v3466_v61, %s2767_s21  ;;  %908 = vrot.lane.b32.xlu0 %v3305_v0, %s2765_s6  ;;  %v3491_v0 = vld [vmem:[%s2899_s29 + $0x102] sm:$0xff] }
  0xcc   : > { %1542 = vmatprep.mubr.f32.mxu0 %v490_v1 }
  0xcd   : > { %v711_v59 = vpop.permute.xlu1 %710  ;;  %v393_v11 = vpop.permute.xlu0 %392  ;;  %1543 = vmatmul.mubr.f32.gmra.mrb[8].mxu0 %v326_v7 }
  0xce   : > { %v475_v18 = vsel %vm303_vm0, %v3118_v35, %v393_v11  ;;  %v798_v25 = vsel %vm303_vm0, %v3208_v12, %v711_v59  ;;  %v3582_v59 = vld [vmem:[%s2899_s29 + $0x182] sm:$0xff] }
  0xcf   : > { %940 = vrot.lane.b32.xlu1 %v3354_v40, %s2767_s21  ;;  %618 = vrot.lane.b32.xlu0 %v3331_v23, %s2767_s21 }
  0xd1   : > { %v425_v9 = vpop.permute.xlu1 %424  ;;  %v226_v16 = vpop.permute.xlu0 %225 }
  0xd2   : > { %v483_v54 = vsel %vm312_vm1, %v475_v18, %v425_v9  ;;  %v3597_v18 = vld [vmem:[%s2899_s29 + $0x190] sm:$0xff] }
  0xd3   : > { %1040 = vrot.lane.b32.xlu1 %v3481_v15, %s2766_s30  ;;  %720 = vrot.lane.b32.xlu0 %v3484_v8, %s2766_s30 }
  0xd5   : > { %v743_v17 = vpop.permute.xlu1 %742  ;;  %v547_v40 = vpop.permute.xlu0 %546 }
  0xd6   : > { %v806_v35 = vsel %vm312_vm1, %v798_v25, %v743_v17  ;;  %v634_v12 = vsel %vm303_vm0, %v2962_v41, %v547_v40 }
  0xd7   : > { %752 = vrot.lane.b32.xlu1 %v3491_v0, %s2765_s6  ;;  %556 = vrot.lane.b32.xlu0 %v3373_v50, %s2766_s30 }
  0xd9   : > { %v457_v20 = vpop.permute.xlu1 %456  ;;  %v258_v21 = vpop.permute.xlu0 %257 }
  0xda   : > { %v491_v24 = vsel %vm321_vm2, %v483_v54, %v457_v20  ;;  %v3600_v54 = vld [vmem:[%s2899_s29 + $0x121] sm:$0xff] }
  0xdb   : > { %1072 = vrot.lane.b32.xlu1 %v3500_v19, %s2765_s6  ;;  %878 = vrot.lane.b32.xlu0 %v3331_v23, %s2766_s30  ;;  %v309_v23 = vsel %vm303_vm0, %v3043_v4, %v226_v16 }
  0xdc   : > { %1547 = vmatprep.mubr.f32.mxu0 %v491_v24  ;;  %v318_v34 = vsel %vm312_vm1, %v309_v23, %v258_v21 }
  0xdd   : > { %v775_v28 = vpop.permute.xlu1 %774  ;;  %v579_v29 = vpop.permute.xlu0 %578 }
  0xde   : > { %v814_v30 = vsel %vm321_vm2, %v806_v35, %v775_v28  ;;  %v642_v36 = vsel %vm312_vm1, %v634_v12, %v579_v29  ;;  %v3616_v28 = vld [vmem:[%s2899_s29 + $0x191] sm:$0xff] }
  0xdf   : > { %784 = vrot.lane.b32.xlu1 %v3511_v27, %s2767_s21  ;;  %588 = vrot.lane.b32.xlu0 %v3426_v31, %s2765_s6 }
  0xe0   : > { %1627 = vmatprep.mubr.f32.mxu1 %v814_v30 }
  0xe1   : > { %v611_v38 = vpop.permute.xlu1 %610  ;;  %v290_v39 = vpop.permute.xlu0 %289 }
  0xe2   : > { %v650_v43 = vsel %vm321_vm2, %v642_v36, %v611_v38  ;;  %v327_v31 = vsel %vm321_vm2, %v318_v34, %v290_v39  ;;  %v2145_v36 = vld [vmem:[%s2899_s29 + $0x130] sm:$0xff]  ;;  %v2084_v38 = vld [vmem:[%s2899_s29 + $0x42] sm:$0xff] }
  0xe3   : > { %1104 = vrot.lane.b32.xlu1 %v3524_v32, %s2767_s21  ;;  %910 = vrot.lane.b32.xlu0 %v3423_v33, %s2765_s6  ;;  %v3549_v33 = vld [vmem:[%s2899_s29 + $0x112] sm:$0xff] }
  0xe4   : > { %1548 = vmatmul.mubr.f32.gmra.mrb[10].mxu0 %v327_v31  ;;  %1628 = vmatmul.mubr.f32.vlgmr.msra.gmra.mrb[0].mxu1 %v650_v43 }
  0xe5   : > { %v713_v41 = vpop.permute.xlu1 %712  ;;  %v395_v4 = vpop.permute.xlu0 %394 }
  0xe6   : > { %v476_v51 = vsel %vm303_vm0, %v3176_v2, %v395_v4  ;;  %v799_v62 = vsel %vm303_vm0, %v3183_v3, %v713_v41  ;;  %v1422_v41 = vld [vmem:[%s4009_s1 + $0x300] sm:$0xff] }
  0xe7   : > { %942 = vrot.lane.b32.xlu1 %v3448_v44, %s2767_s21  ;;  %620 = vrot.lane.b32.xlu0 %v3437_v42, %s2767_s21 }
  0xe9   : > { %v427_v47 = vpop.permute.xlu1 %426  ;;  %v228_v48 = vpop.permute.xlu0 %227 }
  0xea   : > { %v484_v10 = vsel %vm312_vm1, %v476_v51, %v427_v47 }
  0xeb   : > { %1042 = vrot.lane.b32.xlu1 %v3539_v45, %s2766_s30  ;;  %722 = vrot.lane.b32.xlu0 %v3542_v46, %s2766_s30 }
  0xed   : > { %v745_v49 = vpop.permute.xlu1 %744  ;;  %v549_v60 = vpop.permute.xlu0 %548 }
  0xee   : > { %v807_v2 = vsel %vm312_vm1, %v799_v62, %v745_v49  ;;  %v635_v3 = vsel %vm303_vm0, %v3006_v58, %v549_v60 }
  0xef   : > { %754 = vrot.lane.b32.xlu1 %v3549_v33, %s2765_s6  ;;  %558 = vrot.lane.b32.xlu0 %v3455_v52, %s2766_s30 }
  0xf1   : > { %v459_v56 = vpop.permute.xlu1 %458  ;;  %v260_v57 = vpop.permute.xlu0 %259 }
  0xf2   : > { %v492_v22 = vsel %vm321_vm2, %v484_v10, %v459_v56 }
  0xf3   : > { %1074 = vrot.lane.b32.xlu1 %v3558_v55, %s2765_s6  ;;  %880 = vrot.lane.b32.xlu0 %v3437_v42, %s2766_s30  ;;  %v310_v42 = vsel %vm303_vm0, %v3100_v26, %v228_v48  ;;  %v3643_v48 = vld [vmem:[%s2899_s29 + $0x192] sm:$0xff] }
  0xf4   : > { %1552 = vmatprep.mubr.f32.mxu0 %v492_v22  ;;  %v319_v11 = vsel %vm312_vm1, %v310_v42, %v260_v57  ;;  %v1425_v22 = vld [vmem:[%s4009_s1 + $0x318] sm:$0xff]  ;;  %v3670_v42 = vld [vmem:[%s2899_s29 + $0x1a0] sm:$0xff] }
  0xf5   : > { %v777_v5 = vpop.permute.xlu1 %776  ;;  %v581_v7 = vpop.permute.xlu0 %580 }
  0xf6   : > { %v815_v1 = vsel %vm321_vm2, %v807_v2, %v777_v5  ;;  %v643_v9 = vsel %vm312_vm1, %v635_v3, %v581_v7  ;;  %v1426_v7 = vld [vmem:[%s4009_s1 + $0x320] sm:$0xff] }
  0xf7   : > { %786 = vrot.lane.b32.xlu1 %v3569_v63, %s2767_s21  ;;  %590 = vrot.lane.b32.xlu0 %v3484_v8, %s2765_s6 }
  0xf8   : > { %1632 = vmatprep.mubr.f32.mxu1 %v815_v1  ;;  %v1427_v1 = vld [vmem:[%s4009_s1 + $0x328] sm:$0xff] }
  0xf9   : > { %v613_v16 = vpop.permute.xlu1 %612  ;;  %v292_v17 = vpop.permute.xlu0 %291 }
  0xfa   : > { %v651_v40 = vsel %vm321_vm2, %v643_v9, %v613_v16  ;;  %v328_v8 = vsel %vm321_vm2, %v319_v11, %v292_v17  ;;  %v1428_v9 = vld [vmem:[%s4009_s1 + $0x330] sm:$0xff]  ;;  %v1429_v16 = vld [vmem:[%s4009_s1 + $0x338] sm:$0xff] }
  0xfb   : > { %1106 = vrot.lane.b32.xlu1 %v3582_v59, %s2767_s21  ;;  %912 = vrot.lane.b32.xlu0 %v3481_v15, %s2765_s6  ;;  %v3607_v15 = vld [vmem:[%s2899_s29 + $0x122] sm:$0xff]  ;;  %v2579_v17 = vpack.c.bf16 %v1429_v16, %v1428_v9  ;;  %v2147_v9 = vld [vmem:[%s2899_s29 + $0xd1] sm:$0xff] }
  0xfc   : > { %1553 = vmatmul.mubr.f32.gmra.mrb[12].mxu0 %v328_v8  ;;  %1633 = vmatmul.mubr.f32.gmra.mrb[2].mxu1 %v651_v40  ;;  %v3683_v40 = vld [vmem:[%s2899_s29 + $0x1a1] sm:$0xff] }
  0xfd   : > { %v715_v58 = vpop.permute.xlu1 %714  ;;  %v397_v26 = vpop.permute.xlu0 %396 }
  0xfe   : > { %v477_v35 = vsel %vm303_vm0, %v3215_v13, %v397_v26  ;;  %v800_v34 = vsel %vm303_vm0, %v3221_v14, %v715_v58  ;;  %v1430_v26 = vld [vmem:[%s4009_s1 + $0x340] sm:$0xff] }
  0xff   : > { %944 = vrot.lane.b32.xlu1 %v3500_v19, %s2767_s21  ;;  %622 = vrot.lane.b32.xlu0 %v3491_v0, %s2767_s21 }
 0x101   : > { %v429_v20 = vpop.permute.xlu1 %428  ;;  %v230_v21 = vpop.permute.xlu0 %229 }
 0x102   : > { %v485_v29 = vsel %vm312_vm1, %v477_v35, %v429_v20  ;;  %v311_v4 = vsel %vm303_vm0, %v3153_v53, %v230_v21  ;;  %v1424_v53 = vld [vmem:[%s4009_s1 + $0x310] sm:$0xff]  ;;  %v1431_v20 = vld [vmem:[%s4009_s1 + $0x348] sm:$0xff] }
 0x103   : > { %1044 = vrot.lane.b32.xlu1 %v3597_v18, %s2766_s30  ;;  %724 = vrot.lane.b32.xlu0 %v3600_v54, %s2766_s30  ;;  %v2571_v62 = vpack.c.bf16 %v1425_v22, %v1424_v53 }
 0x105   : > { %v747_v24 = vpop.permute.xlu1 %746  ;;  %v551_v25 = vpop.permute.xlu0 %550 }
 0x106   : > { %v808_v13 = vsel %vm312_vm1, %v800_v34, %v747_v24  ;;  %v636_v47 = vsel %vm303_vm0, %v2084_v38, %v551_v25  ;;  %v3698_v24 = vld [vmem:[%s2899_s29 + $0x1a2] sm:$0xff] }
 0x107   : > { %756 = vrot.lane.b32.xlu1 %v3607_v15, %s2765_s6  ;;  %560 = vrot.lane.b32.xlu0 %v3511_v27, %s2766_s30  ;;  %v2178_v25 = vld [vmem:[%s2899_s29 + $0x142] sm:$0xff] }
 0x108   : > { %v2146_v38 = vld [vmem:[%s2899_s29 + $0xc1] sm:$0xff] }
 0x109   : > { %v461_v30 = vpop.permute.xlu1 %460  ;;  %v262_v23 = vpop.permute.xlu0 %261 }
 0x10a   : > { %v493_v12 = vsel %vm321_vm2, %v485_v29, %v461_v30  ;;  %v320_v49 = vsel %vm312_vm1, %v311_v4, %v262_v23 }
 0x10b   : > { %1076 = vrot.lane.b32.xlu1 %v3616_v28, %s2765_s6  ;;  %882 = vrot.lane.b32.xlu0 %v3491_v0, %s2766_s30  ;;  %v1423_v0 = vld [vmem:[%s4009_s1 + $0x308] sm:$0xff] }
 0x10c   : > { %1557 = vmatprep.mubr.f32.mxu0 %v493_v12  ;;  %v2567_v14 = vpack.c.bf16 %v1423_v0, %v1422_v41 }
 0x10d   : > { %v779_v39 = vpop.permute.xlu1 %778  ;;  %v583_v43 = vpop.permute.xlu0 %582 }
 0x10e   : > { %v816_v31 = vsel %vm321_vm2, %v808_v13, %v779_v39  ;;  %v644_v60 = vsel %vm312_vm1, %v636_v47, %v583_v43  ;;  %2568 = vmatprep.subr.bf16.mxu1 %v2567_v14 }
 0x10f   : > { %788 = vrot.lane.b32.xlu1 %v2145_v36, %s2767_s21  ;;  %592 = vrot.lane.b32.xlu0 %v3542_v46, %s2765_s6  ;;  %v2085_v36 = vld [vmem:[%s2899_s29 + $0x52] sm:$0xff] }
 0x110   : > { %1637 = vmatprep.mubr.f32.mxu1 %v816_v31  ;;  %2570 = vmatpush3.bf16.msra.mxu1 %v2567_v14 }
 0x111   : > { %v615_v51 = vpop.permute.xlu1 %614  ;;  %v294_v10 = vpop.permute.xlu0 %293  ;;  %2572 = vmatprep.subr.bf16.mxu1 %v2571_v62 }
 0x112   : > { %v652_v56 = vsel %vm321_vm2, %v644_v60, %v615_v51  ;;  %v329_v57 = vsel %vm321_vm2, %v320_v49, %v294_v10 }
 0x113   : > { %1108 = vrot.lane.b32.xlu1 %v3643_v48, %s2767_s21  ;;  %914 = vrot.lane.b32.xlu0 %v3539_v45, %s2765_s6  ;;  %v2575_v45 = vpack.c.bf16 %v1427_v1, %v1426_v7 }
 0x114   : > { %1558 = vmatmul.mubr.f32.gmra.mrb[14].mxu0 %v329_v57  ;;  %1638 = vmatmul.mubr.f32.gmra.mrb[4].mxu1 %v652_v56  ;;  %v2200_v57 = vld [vmem:[%s2899_s29 + $0x1b1] sm:$0xff] }
 0x115   : > { %v1037_v2 = vpop.permute.xlu1 %1036  ;;  %v717_v5 = vpop.permute.xlu0 %716  ;;  %2574 = vmatpush3.bf16.msra.mxu1 %v2571_v62  ;;  %v3744_v62 = vld [vmem:[%s2899_s29 + $0x1b2] sm:$0xff] }
 0x116   : > { %2576 = vmatprep.subr.bf16.mxu1 %v2575_v45  ;;  %v801_v21 = vsel %vm303_vm0, %v3267_v37, %v717_v5  ;;  %v1433_v37 = vld [vmem:[%s4009_s1 + $0x358] sm:$0xff]  ;;  %v1124_v34 = vsel %vm303_vm0, %v2178_v25, %v1037_v2 }
 0x117   : > { %946 = vrot.lane.b32.xlu1 %v3558_v55, %s2767_s21  ;;  %624 = vrot.lane.b32.xlu0 %v3549_v33, %s2767_s21 }
 0x119   : > { %v749_v3 = vpop.permute.xlu1 %748  ;;  %v553_v11 = vpop.permute.xlu0 %552  ;;  %2578 = vmatpush3.bf16.msra.mxu1 %v2575_v45 }
 0x11a   : > { %2580 = vmatprep.subr.bf16.mxu1 %v2579_v17  ;;  %v809_v35 = vsel %vm312_vm1, %v801_v21, %v749_v3  ;;  %v637_v41 = vsel %vm303_vm0, %v2085_v36, %v553_v11  ;;  %v2086_v11 = vld [vmem:[%s2899_s29 + $0x62] sm:$0xff] }
 0x11b   : > { %884 = vrot.lane.b32.xlu1 %v3549_v33, %s2766_s30  ;;  %1046 = vrot.lane.b32.xlu0 %v3670_v42, %s2766_s30  ;;  %v2583_v33 = vpack.c.bf16 %v1431_v20, %v1430_v26  ;;  %v3772_v26 = vld [vmem:[%s2899_s29 + $0x1c0] sm:$0xff] }
 0x11d   : > { %v1069_v8 = vpop.permute.xlu1 %1068  ;;  %v875_v58 = vpop.permute.xlu0 %874  ;;  %2582 = vmatpush3.bf16.msra.mxu1 %v2579_v17 }
 0x11e   : > { %2584 = vmatprep.subr.bf16.mxu1 %v2583_v33  ;;  %v1132_v13 = vsel %vm312_vm1, %v1124_v34, %v1069_v8  ;;  %v962_v0 = vsel %vm303_vm0, %v2146_v38, %v875_v58  ;;  %v2161_v58 = vld [vmem:[%s2899_s29 + $0x132] sm:$0xff] }
 0x11f   : > { %1190 = vrot.lane.b32.xlu1 %v3448_v44, %s2766_s30  ;;  %1078 = vrot.lane.b32.xlu0 %v3683_v40, %s2765_s6  ;;  %v1432_v44 = vld [vmem:[%s4009_s1 + $0x350] sm:$0xff] }
 0x120   : > { %v2587_v12 = vpack.c.bf16 %v1433_v37, %v1432_v44  ;;  %v2209_v37 = vld [vmem:[%s2899_s29 + $0x1c2] sm:$0xff] }
 0x121   : > { %v781_v29 = vpop.permute.xlu1 %780  ;;  %v585_v30 = vpop.permute.xlu0 %584  ;;  %2586 = vmatpush3.bf16.msra.mxu1 %v2583_v33 }
 0x122   : > { %v817_v23 = vsel %vm321_vm2, %v809_v35, %v781_v29  ;;  %2588 = vmatprep.subr.bf16.mxu1 %v2587_v12  ;;  %v645_v14 = vsel %vm312_vm1, %v637_v41, %v585_v30  ;;  %v2201_v30 = vld [vmem:[%s2899_s29 + $0x1c1] sm:$0xff] }
 0x123   : > { %1110 = vrot.lane.b32.xlu1 %v3698_v24, %s2767_s21  ;;  %916 = vrot.lane.b32.xlu0 %v3597_v18, %s2765_s6 }
 0x124   : > { %1642 = vmatprep.mubr.f32.mxu1 %v817_v23 }
 0x125   : > { %v1101_v39 = vpop.permute.xlu1 %1100  ;;  %v907_v43 = vpop.permute.xlu0 %906  ;;  %2590 = vmatpush3.bf16.msra.mxu1 %v2587_v12 }
 0x126   : > { %v1140_v31 = vsel %vm321_vm2, %v1132_v13, %v1101_v39  ;;  %v970_v4 = vsel %vm312_vm1, %v962_v0, %v907_v43  ;;  %v2225_v0 = vld [vmem:[%s2899_s29 + $0x1d1] sm:$0xff] }
 0x127   : > { %1222 = vrot.lane.b32.xlu1 %v3466_v61, %s2765_s6  ;;  %1192 = vrot.lane.b32.xlu0 %v3500_v19, %s2766_s30  ;;  %v3733_v19 = vld [vmem:[%s2899_s29 + $0x1b0] sm:$0xff] }
 0x128   : > { %1732 = vmatprep.mubr.f32.mxu0 %v1140_v31 }
 0x129   : > { %v939_v47 = vpop.permute.xlu1 %938  ;;  %v617_v49 = vpop.permute.xlu0 %616 }
 0x12a   : > { %v978_v60 = vsel %vm321_vm2, %v970_v4, %v939_v47  ;;  %v653_v51 = vsel %vm321_vm2, %v645_v14, %v617_v49  ;;  %v2087_v14 = vld [vmem:[%s2899_s29 + $0x72] sm:$0xff]  ;;  %v2148_v4 = vld [vmem:[%s2899_s29 + $0xe1] sm:$0xff] }
 0x12b   : > { %1224 = vrot.lane.b32.xlu1 %v3524_v32, %s2765_s6  ;;  %948 = vrot.lane.b32.xlu0 %v3616_v28, %s2767_s21 }
 0x12c   : > { %1643 = vmatmul.mubr.f32.gmra.mrb[6].mxu1 %v653_v51  ;;  %1733 = vmatmul.mubr.f32.vlgmr.msra.gmra.mrb[16].mxu0 %v978_v60 }
 0x12d   : > { %v1039_v10 = vpop.permute.xlu1 %1038  ;;  %v719_v56 = vpop.permute.xlu0 %718 }
 0x12e   : > { %v1125_v3 = vsel %vm303_vm0, %v3396_v6, %v1039_v10 }
 0x12f   : > { %886 = vrot.lane.b32.xlu1 %v3607_v15, %s2766_s30  ;;  %1048 = vrot.lane.b32.xlu0 %v3733_v19, %s2766_s30  ;;  %v802_v15 = vsel %vm303_vm0, %v3373_v50, %v719_v56  ;;  %v2233_v56 = vld [vmem:[%s2899_s29 + $0x1d2] sm:$0xff] }
 0x131   : > { %v751_v53 = vpop.permute.xlu1 %750  ;;  %v555_v22 = vpop.permute.xlu0 %554 }
 0x132   : > { %v810_v7 = vsel %vm312_vm1, %v802_v15, %v751_v53 }
 0x133   : > { %1194 = vrot.lane.b32.xlu1 %v3558_v55, %s2766_s30  ;;  %1080 = vrot.lane.b32.xlu0 %v2200_v57, %s2765_s6 }
 0x135   : > { %v1071_v2 = vpop.permute.xlu1 %1070  ;;  %v877_v5 = vpop.permute.xlu0 %876 }
 0x136   : > { %v1133_v50 = vsel %vm312_vm1, %v1125_v3, %v1071_v2  ;;  %v963_v6 = vsel %vm303_vm0, %v2147_v9, %v877_v5 }
 0x137   : > { %1112 = vrot.lane.b32.xlu1 %v3744_v62, %s2767_s21  ;;  %918 = vrot.lane.b32.xlu0 %v3670_v42, %s2765_s6 }
 0x139   : > { %v783_v55 = vpop.permute.xlu1 %782  ;;  %v587_v1 = vpop.permute.xlu0 %586 }
 0x13a   : > { %v818_v45 = vsel %vm321_vm2, %v810_v7, %v783_v55 }
 0x13b   : > { %1226 = vrot.lane.b32.xlu1 %v3582_v59, %s2765_s6  ;;  %1196 = vrot.lane.b32.xlu0 %v3616_v28, %s2766_s30  ;;  %v638_v28 = vsel %vm303_vm0, %v2086_v11, %v555_v22 }
 0x13c   : > { %1647 = vmatprep.mubr.f32.mxu1 %v818_v45  ;;  %v646_v20 = vsel %vm312_vm1, %v638_v28, %v587_v1  ;;  %v2088_v28 = vld [vmem:[%s2899_s29 + $0x82] sm:$0xff] }
 0x13d   : > { %v1103_v16 = vpop.permute.xlu1 %1102  ;;  %v909_v17 = vpop.permute.xlu0 %908 }
 0x13e   : > { %v1141_v8 = vsel %vm321_vm2, %v1133_v50, %v1103_v16  ;;  %v971_v33 = vsel %vm312_vm1, %v963_v6, %v909_v17 }
 0x13f   : > { %1228 = vrot.lane.b32.xlu1 %v3643_v48, %s2765_s6  ;;  %950 = vrot.lane.b32.xlu0 %v3683_v40, %s2767_s21 }
 0x140   : > { %1737 = vmatprep.mubr.f32.mxu0 %v1141_v8 }
 0x141   : > { %v941_v21 = vpop.permute.xlu1 %940  ;;  %v619_v25 = vpop.permute.xlu0 %618 }
 0x142   : > { %v979_v35 = vsel %vm321_vm2, %v971_v33, %v941_v21  ;;  %v654_v29 = vsel %vm321_vm2, %v646_v20, %v619_v25 }
 0x143   : > { %888 = vrot.lane.b32.xlu1 %v2161_v58, %s2766_s30  ;;  %1050 = vrot.lane.b32.xlu0 %v3772_v26, %s2766_s30  ;;  %v2149_v58 = vld [vmem:[%s2899_s29 + $0xf1] sm:$0xff] }
 0x144   : > { %1648 = vmatmul.mubr.f32.gmra.mrb[8].mxu1 %v654_v29  ;;  %1738 = vmatmul.mubr.f32.gmra.mrb[18].mxu0 %v979_v35 }
 0x145   : > { %v1041_v23 = vpop.permute.xlu1 %1040  ;;  %v721_v44 = vpop.permute.xlu0 %720 }
 0x146   : > { %v1126_v41 = vsel %vm303_vm0, %v3466_v61, %v1041_v23 }
 0x147   : > { %1198 = vrot.lane.b32.xlu1 %v3683_v40, %s2766_s30  ;;  %1082 = vrot.lane.b32.xlu0 %v2201_v30, %s2765_s6  ;;  %v803_v40 = vsel %vm303_vm0, %v3455_v52, %v721_v44 }
 0x149   : > { %v753_v12 = vpop.permute.xlu1 %752  ;;  %v557_v34 = vpop.permute.xlu0 %556 }
 0x14a   : > { %v811_v38 = vsel %vm312_vm1, %v803_v40, %v753_v12  ;;  %v639_v51 = vsel %vm303_vm0, %v2087_v14, %v557_v34 }
 0x14b   : > { %1114 = vrot.lane.b32.xlu1 %v2209_v37, %s2767_s21  ;;  %920 = vrot.lane.b32.xlu0 %v3733_v19, %s2765_s6 }
 0x14d   : > { %v1073_v36 = vpop.permute.xlu1 %1072  ;;  %v879_v13 = vpop.permute.xlu0 %878 }
 0x14e   : > { %v1134_v52 = vsel %vm312_vm1, %v1126_v41, %v1073_v36  ;;  %v964_v10 = vsel %vm303_vm0, %v2148_v4, %v879_v13 }
 0x14f   : > { %1230 = vrot.lane.b32.xlu1 %v3698_v24, %s2765_s6  ;;  %1200 = vrot.lane.b32.xlu0 %v2200_v57, %s2766_s30 }
 0x151   : > { %v785_v39 = vpop.permute.xlu1 %784  ;;  %v589_v43 = vpop.permute.xlu0 %588 }
 0x152   : > { %v819_v31 = vsel %vm321_vm2, %v811_v38, %v785_v39  ;;  %v647_v61 = vsel %vm312_vm1, %v639_v51, %v589_v43  ;;  %v2089_v51 = vld [vmem:[%s2899_s29 + $0x92] sm:$0xff] }
 0x153   : > { %1232 = vrot.lane.b32.xlu1 %v3744_v62, %s2765_s6  ;;  %952 = vrot.lane.b32.xlu0 %v2200_v57, %s2767_s21  ;;  %s2592_s21 = smul.u32 40, %s2751_s13 }
 0x154   : > { %1652 = vmatprep.mubr.f32.mxu1 %v819_v31 }
 0x155   : > { %v1105_v47 = vpop.permute.xlu1 %1104  ;;  %v911_v49 = vpop.permute.xlu0 %910  ;;  %s1901_s8 = sadd.s32 %s2592_s21, %s2243_s7 }
 0x156   : > { %v1142_v60 = vsel %vm321_vm2, %v1134_v52, %v1105_v47  ;;  %v972_v57 = vsel %vm312_vm1, %v964_v10, %v911_v49  ;;  %s2244_s17 = sshll.u32 %s1901_s8, 7 }
 0x157   : > { %1204 = vrot.lane.b32.xlu1 %v2225_v0, %s2766_s30  ;;  %1202 = vrot.lane.b32.xlu0 %v2201_v30, %s2766_s30  ;;  %s3948_s13 = scalar_lea.hbm %s4010_s2, %s2244_s17 }
 0x158   : > { %1742 = vmatprep.mubr.f32.mxu0 %v1142_v60 }
 0x159   : > { %v943_v53 = vpop.permute.xlu1 %942  ;;  %v621_v22 = vpop.permute.xlu0 %620 }
 0x15a   : > { %v980_v2 = vsel %vm321_vm2, %v972_v57, %v943_v53  ;;  %v655_v5 = vsel %vm321_vm2, %v647_v61, %v621_v22 }
 0x15b   : > { %1236 = vrot.lane.b32.xlu1 %v2233_v56, %s2765_s6  ;;  %1234 = vrot.lane.b32.xlu0 %v2209_v37, %s2765_s6  ;;  %v2150_v56 = vld [vmem:[%s2899_s29 + $0x101] sm:$0xff] }
 0x15c   : > { %1653 = vmatmul.mubr.f32.gmra.mrb[10].mxu1 %v655_v5  ;;  %1743 = vmatmul.mubr.f32.gmra.mrb[20].mxu0 %v980_v2 }
 0x15d   : > { %v1043_v15 = vpop.permute.xlu1 %1042  ;;  %v723_v7 = vpop.permute.xlu0 %722 }
 0x15e   : > { %v804_v11 = vsel %vm303_vm0, %v3511_v27, %v723_v7  ;;  %v1127_v8 = vsel %vm303_vm0, %v3524_v32, %v1043_v15 }
 0x161   : > { %v755_v55 = vpop.permute.xlu1 %754  ;;  %v559_v1 = vpop.permute.xlu0 %558 }
 0x162   : > { %v812_v50 = vsel %vm312_vm1, %v804_v11, %v755_v55  ;;  %v640_v27 = vsel %vm303_vm0, %v2088_v28, %v559_v1 }
 0x165   : > { %v1075_v45 = vpop.permute.xlu1 %1074  ;;  %v881_v3 = vpop.permute.xlu0 %880 }
 0x166   : > { %v1135_v6 = vsel %vm312_vm1, %v1127_v8, %v1075_v45  ;;  %v965_v25 = vsel %vm303_vm0, %v2149_v58, %v881_v3 }
 0x169   : > { %v787_v9 = vpop.permute.xlu1 %786  ;;  %v591_v16 = vpop.permute.xlu0 %590 }
 0x16a   : > { %v820_v17 = vsel %vm321_vm2, %v812_v50, %v787_v9  ;;  %v648_v29 = vsel %vm312_vm1, %v640_v27, %v591_v16 }
 0x16b   : > { %1657 = vmatprep.mubr.f32.mxu1 %v820_v17 }
 0x16d   : > { %v1107_v20 = vpop.permute.xlu1 %1106  ;;  %v913_v33 = vpop.permute.xlu0 %912 }
 0x16e   : > { %v1143_v21 = vsel %vm321_vm2, %v1135_v6, %v1107_v20  ;;  %v973_v30 = vsel %vm312_vm1, %v965_v25, %v913_v33  ;;  %v2210_v20 = vld [vmem:[%s2899_s29 + $0x160] sm:$0xff] }
 0x16f   : > { %1747 = vmatprep.mubr.f32.mxu0 %v1143_v21 }
 0x170   : > { %v2279_v35 = vpop.f32.mrb[0].mxu0 }
 0x171   : > { %v945_v23 = vpop.permute.xlu1 %944  ;;  %v623_v32 = vpop.permute.xlu0 %622 }
 0x172   : > { %v981_v44 = vsel %vm321_vm2, %v973_v30, %v945_v23  ;;  %v656_v37 = vsel %vm321_vm2, %v648_v29, %v623_v32  ;;  %v2280_v12 = vpop.f32.mrb[1].mxu0  ;;  %v2211_v23 = vld [vmem:[%s2899_s29 + $0x170] sm:$0xff] }
 0x173   : > { %v3833_v34 = vadd.f32 %v2280_v12, %v2279_v35  ;;  %1658 = vmatmul.mubr.f32.gmra.mrb[12].mxu1 %v656_v37  ;;  %1748 = vmatmul.mubr.f32.gmra.mrb[22].mxu0 %v981_v44 }
 0x175   : > { %v1045_v36 = vpop.permute.xlu1 %1044  ;;  %v725_v13 = vpop.permute.xlu0 %724 }
 0x176   : > { %v805_v14 = vsel %vm303_vm0, %v3569_v63, %v725_v13  ;;  %v1128_v60 = vsel %vm303_vm0, %v3582_v59, %v1045_v36 }
 0x179   : > { %v757_v40 = vpop.permute.xlu1 %756  ;;  %v561_v38 = vpop.permute.xlu0 %560 }
 0x17a   : > { %v813_v52 = vsel %vm312_vm1, %v805_v14, %v757_v40  ;;  %v641_v63 = vsel %vm303_vm0, %v2089_v51, %v561_v38  ;;  %v2212_v51 = vld [vmem:[%s2899_s29 + $0x180] sm:$0xff] }
 0x17c   : > { %v2282_v39 = vpop.f32.mrb[2].mxu0 }
 0x17d   : > { %v1077_v43 = vpop.permute.xlu1 %1076  ;;  %v883_v31 = vpop.permute.xlu0 %882 }
 0x17e   : > { %v2283_v41 = vpop.f32.mrb[3].mxu0  ;;  %v1136_v10 = vsel %vm312_vm1, %v1128_v60, %v1077_v43  ;;  %v966_v22 = vsel %vm303_vm0, %v2150_v56, %v883_v31 }
 0x17f   : > { %v3835_v0 = vadd.f32 %v2283_v41, %v2282_v39 }
 0x181   : > { %v789_v4 = vpop.permute.xlu1 %788  ;;  %v593_v47 = vpop.permute.xlu0 %592 }
 0x182   : > { %v821_v49 = vsel %vm321_vm2, %v813_v52, %v789_v4  ;;  %v649_v5 = vsel %vm312_vm1, %v641_v63, %v593_v47 }
 0x183   : > { %1662 = vmatprep.mubr.f32.mxu1 %v821_v49 }
 0x185   : > { %v1109_v61 = vpop.permute.xlu1 %1108  ;;  %v915_v57 = vpop.permute.xlu0 %914 }
 0x186   : > { %v1144_v53 = vsel %vm321_vm2, %v1136_v10, %v1109_v61  ;;  %v974_v15 = vsel %vm312_vm1, %v966_v22, %v915_v57 }
 0x187   : > { %1752 = vmatprep.mubr.f32.mxu0 %v1144_v53 }
 0x188   : > { %v2285_v2 = vpop.f32.mrb[4].mxu0 }
 0x189   : > { %v947_v7 = vpop.permute.xlu1 %946  ;;  %v625_v59 = vpop.permute.xlu0 %624 }
 0x18a   : > { %v982_v55 = vsel %vm321_vm2, %v974_v15, %v947_v7  ;;  %v657_v1 = vsel %vm321_vm2, %v649_v5, %v625_v59  ;;  %v2286_v45 = vpop.f32.mrb[5].mxu0 }
 0x18b   : > { %v3853_v3 = vadd.f32 %v2286_v45, %v2285_v2  ;;  %1663 = vmatmul.mubr.f32.gmra.mrb[14].mxu1 %v657_v1  ;;  %1753 = vmatmul.mubr.f32.gmra.mrb[24].mxu0 %v982_v55 }
 0x18d   : > { %v885_v11 = vpop.permute.xlu1 %884  ;;  %v1047_v50 = vpop.permute.xlu0 %1046 }
 0x18e   : > { %v1129_v17 = vsel %vm303_vm0, %v3643_v48, %v1047_v50  ;;  %v967_v48 = vsel %vm303_vm0, %v3542_v46, %v885_v11 }
 0x191   : > { %v1191_v9 = vpop.permute.xlu1 %1190  ;;  %v1079_v16 = vpop.permute.xlu0 %1078 }
 0x192   : > { %v1137_v28 = vsel %vm312_vm1, %v1129_v17, %v1079_v16  ;;  %v1246_v25 = vsel %vm303_vm0, %v2210_v20, %v1191_v9 }
 0x194   : > { %v2288_v8 = vpop.f32.mrb[6].mxu0 }
 0x195   : > { %v1111_v6 = vpop.permute.xlu1 %1110  ;;  %v917_v58 = vpop.permute.xlu0 %916 }
 0x196   : > { %v1145_v33 = vsel %vm321_vm2, %v1137_v28, %v1111_v6  ;;  %v2289_v21 = vpop.f32.mrb[7].mxu0  ;;  %v975_v32 = vsel %vm312_vm1, %v967_v48, %v917_v58 }
 0x197   : > { %v3860_v27 = vadd.f32 %v2289_v21, %v2288_v8  ;;  %1757 = vmatprep.mubr.f32.mxu0 %v1145_v33 }
 0x199   : > { %v1223_v35 = vpop.permute.xlu1 %1222  ;;  %v1193_v29 = vpop.permute.xlu0 %1192 }
 0x19a   : > { %v1254_v30 = vsel %vm312_vm1, %v1246_v25, %v1223_v35  ;;  %v1247_v44 = vsel %vm303_vm0, %v2211_v23, %v1193_v29  ;;  %v2153_v25 = vld [vmem:[%s2899_s29 + $0x131] sm:$0xff] }
 0x19b   : > { %1262 = vst.msk [vmem:[#allocation2 + $0x30] sm:$0xff] %vm321_vm2, %v1254_v30 }
 0x19d   : > { %v1225_v37 = vpop.permute.xlu1 %1224  ;;  %v949_v12 = vpop.permute.xlu0 %948 }
 0x19e   : > { %v1255_v36 = vsel %vm312_vm1, %v1247_v44, %v1225_v37  ;;  %v983_v13 = vsel %vm321_vm2, %v975_v32, %v949_v12 }
 0x19f   : > { %1263 = vst.msk [vmem:[#allocation2 + $0x68] sm:$0xff] %vm321_vm2, %v1255_v36  ;;  %1758 = vmatmul.mubr.f32.gmra.mrb[26].mxu0 %v983_v13  ;;  %v2217_v13 = vld [vmem:[%s2899_s29 + $0x1d0] sm:$0xff]  ;;  %s157_s29 = sand.u32 1, %s2739_s10  }
 0x1a0   : > { %v2291_v40 = vpop.f32.mrb[8].mxu0  ;;  %s2040_s6 = sshll.u32 %s157_s29, 6  ;;  %s3956_s12 = scalar_lea.sflag [#allocation4], %s157_s29 }
 0x1a1   : > { %v887_v38 = vpop.permute.xlu1 %886  ;;  %v1049_v39 = vpop.permute.xlu0 %1048  ;;  %s3934_s30 = scalar_lea.vmem [#allocation3], %s2040_s6 }
 0x1a2   : > { %v1276_v43 = vld [vmem:[#allocation2 + $0x30] sm:$0xff]  ;;  %v2292_v31 = vpop.f32.mrb[9].mxu0  ;;  %v1130_v4 = vsel %vm303_vm0, %v3698_v24, %v1049_v39  ;;  %v968_v63 = vsel %vm303_vm0, %v3600_v54, %v887_v38  ;;  %s1904_s18 = sshll.u32 %s3934_s30, 4  ;;  %s3950_s18 = int_to_ptr.vmem [resolvable:$true] %s1904_s18 }
 0x1a3   : > { %2459 = vmatprep.mubr.msk.f32.mxu1 %vm321_vm2, %v1276_v43  ;;  %v3874_v46 = vadd.f32 %v2292_v31, %v2291_v40  ;;  %s2669_s28 = scalar_lea.vmem %s3950_s18, 1024  ;;  %p2676_p2 = scmp.lt.s32.totalorder %s3950_s18, %s2674_s24 }
 0x1a4   : > { %p2670_p13 = scmp.ne.s32.totalorder %s3950_s18, %s2669_s28  ;;  %p2677_p4 = scmp.lt.s32.totalorder %s2675_s4, %s2669_s28 }
 0x1a5   : > { %v1195_v41 = vpop.permute.xlu1 %1194  ;;  %v1081_v14 = vpop.permute.xlu0 %1080 }
 0x1a6   : > { %v1283_v52 = vld [vmem:[#allocation2 + $0x68] sm:$0xff]  ;;  %v1138_v47 = vsel %vm312_vm1, %v1130_v4, %v1081_v14  ;;  %v1248_v56 = vsel %vm303_vm0, %v2212_v51, %v1195_v41  ;;  %p2671_p0 = pnand %p2670_p13, %p2837_p3  ;;  %p2678_p5 = por %p2677_p4, %p2676_p2 }
 0x1a7   : > { %2460 = vmatmul.mubr.msk.f32.vlgmr.msra.gmra.mrb[16].mxu1 %vm321_vm2, %v1283_v52 }
 0x1a8   : > { %p2672_p1 = pneg %p2671_p0 }
 0x1a9   : > { %v1113_v49 = vpop.permute.xlu1 %1112  ;;  %v919_v60 = vpop.permute.xlu0 %918 }
 0x1aa   : > { %v1146_v10 = vsel %vm321_vm2, %v1138_v47, %v1113_v49  ;;  %v976_v24 = vsel %vm312_vm1, %v968_v63, %v919_v60  ;;  %p2679_p6 = pnand %p2678_p5, %p2672_p1 }
 0x1ab   : > { %1762 = vmatprep.mubr.f32.mxu0 %v1146_v10 }
 0x1ad   : > { %v1227_v61 = vpop.permute.xlu1 %1226  ;;  %v1197_v57 = vpop.permute.xlu0 %1196 }
 0x1ae   : > { %v1256_v53 = vsel %vm312_vm1, %v1248_v56, %v1227_v61  ;;  %v1249_v22 = vsel %vm303_vm0, %v3597_v18, %v1197_v57 }
 0x1af   : > { %1264 = vst.msk [vmem:[#allocation2 + $0xa0] sm:$0xff] %vm321_vm2, %v1256_v53 }
 0x1b1   : > { %v1229_v2 = vpop.permute.xlu1 %1228  ;;  %v951_v5 = vpop.permute.xlu0 %950 }
 0x1b2   : > { %v1257_v15 = vsel %vm312_vm1, %v1249_v22, %v1229_v2  ;;  %v984_v7 = vsel %vm321_vm2, %v976_v24, %v951_v5 }
 0x1b3   : > { %1265 = vst.msk [vmem:[#allocation2 + $0xd8] sm:$0xff] %vm321_vm2, %v1257_v15  ;;  %1763 = vmatmul.mubr.f32.gmra.mrb[28].mxu0 %v984_v7 }
 0x1b5   : > { %v889_v59 = vpop.permute.xlu1 %888  ;;  %v1051_v55 = vpop.permute.xlu0 %1050 }
 0x1b6   : > { %v1290_v1 = vld [vmem:[#allocation2 + $0xa0] sm:$0xff]  ;;  %v1131_v6 = vsel %vm303_vm0, %v3744_v62, %v1051_v55  ;;  %v969_v62 = vsel %vm303_vm0, %v2153_v25, %v889_v59 }
 0x1b7   : > { %2462 = vmatprep.mubr.msk.f32.mxu1 %vm321_vm2, %v1290_v1  ;;  %v2294_v54 = vpop.f32.mrb[10].mxu0  ;;  %v2335_v45 = vpop.f32.mrb[0].mxu1 }
 0x1b8   : > { %v2295_v11 = vpop.f32.mrb[11].mxu0  ;;  %v2336_v50 = vpop.f32.mrb[1].mxu1 }
 0x1b9   : > { %v1199_v18 = vpop.permute.xlu1 %1198  ;;  %v1083_v9 = vpop.permute.xlu0 %1082  ;;  %v3894_v16 = vadd.f32 %v2295_v11, %v2294_v54  ;;  %v2337_v17 = vadd.f32 %v2336_v50, %v2335_v45 }
 0x1ba   : > { %v1297_v8 = vld [vmem:[#allocation2 + $0xd8] sm:$0xff]  ;;  %v1139_v58 = vsel %vm312_vm1, %v1131_v6, %v1083_v9  ;;  %v1250_v35 = vsel %vm303_vm0, %v3670_v42, %v1199_v18 }
 0x1bb   : > { %2463 = vmatmul.mubr.msk.f32.gmra.mrb[18].mxu1 %vm321_vm2, %v1297_v8  ;;  %v1630_v28 = vadd.f32 %v2337_v17, %v3833_v34 }
 0x1bd   : > { %v1115_v20 = vpop.permute.xlu1 %1114  ;;  %v921_v33 = vpop.permute.xlu0 %920 }
 0x1be   : > { %v1147_v21 = vsel %vm321_vm2, %v1139_v58, %v1115_v20  ;;  %v977_v34 = vsel %vm312_vm1, %v969_v62, %v921_v33 }
 0x1bf   : > { %1767 = vmatprep.mubr.f32.mxu0 %v1147_v21 }
 0x1c1   : > { %v1231_v29 = vpop.permute.xlu1 %1230  ;;  %v1201_v30 = vpop.permute.xlu0 %1200 }
 0x1c2   : > { %v1258_v23 = vsel %vm312_vm1, %v1250_v35, %v1231_v29  ;;  %v1251_v48 = vsel %vm303_vm0, %v3733_v19, %v1201_v30 }
 0x1c3   : > { %1266 = vst.msk [vmem:[#allocation2 + $0x110] sm:$0xff] %vm321_vm2, %v1258_v23 }
 0x1c5   : > { %v1233_v32 = vpop.permute.xlu1 %1232  ;;  %v953_v44 = vpop.permute.xlu0 %952 }
 0x1c6   : > { %v1259_v37 = vsel %vm312_vm1, %v1251_v48, %v1233_v32  ;;  %v985_v42 = vsel %vm321_vm2, %v977_v34, %v953_v44 }
 0x1c7   : > { %1267 = vst.msk [vmem:[#allocation2 + $0x148] sm:$0xff] %vm321_vm2, %v1259_v37  ;;  %1768 = vmatmul.mubr.f32.gmra.mrb[30].mxu0 %v985_v42 }
 0x1c9   : > { %v1205_v12 = vpop.permute.xlu1 %1204  ;;  %v1203_v36 = vpop.permute.xlu0 %1202 }
 0x1ca   : > { %v1304_v40 = vld [vmem:[#allocation2 + $0x110] sm:$0xff]  ;;  %v1253_v38 = vsel %vm303_vm0, %v2217_v13, %v1205_v12  ;;  %v1252_v19 = vsel %vm303_vm0, %v3772_v26, %v1203_v36 }
 0x1cb   : > { %2465 = vmatprep.mubr.msk.f32.mxu1 %vm321_vm2, %v1304_v40 }
 0x1cd   : > { %v1237_v39 = vpop.permute.xlu1 %1236  ;;  %v1235_v43 = vpop.permute.xlu0 %1234 }
 0x1ce   : > { %v1261_v31 = vsel %vm312_vm1, %v1253_v38, %v1237_v39  ;;  %v1260_v41 = vsel %vm312_vm1, %v1252_v19, %v1235_v43  ;;  %v1311_v14 = vld [vmem:[#allocation2 + $0x148] sm:$0xff] }
 0x1cf   : > { %1269 = vst.msk [vmem:[#allocation2 + $0x1b8] sm:$0xff] %vm321_vm2, %v1261_v31  ;;  %1268 = vst.msk [vmem:[#allocation2 + $0x180] sm:$0xff] %vm321_vm2, %v1260_v41  ;;  %2466 = vmatmul.mubr.msk.f32.gmra.mrb[20].mxu1 %vm321_vm2, %v1311_v14  ;;  %v2297_v52 = vpop.f32.mrb[12].mxu0  ;;  %v2338_v4 = vpop.f32.mrb[2].mxu1 }
 0x1d0   : > { %v2298_v47 = vpop.f32.mrb[13].mxu0  ;;  %v2339_v49 = vpop.f32.mrb[3].mxu1 }
 0x1d1   : > { %v2299_v60 = vadd.f32 %v2298_v47, %v2297_v52  ;;  %v2340_v51 = vadd.f32 %v2339_v49, %v2338_v4 }
 0x1d3   : > { %v1635_v26 = vadd.f32 %v2340_v51, %v3835_v0 }
 0x1d6   : > { %v1318_v10 = vld [vmem:[#allocation2 + $0x180] sm:$0xff]  ;;  %v1325_v56 = vld [vmem:[#allocation2 + $0x1b8] sm:$0xff] }
 0x1d7   : > { %2468 = vmatprep.mubr.msk.f32.mxu1 %vm321_vm2, %v1318_v10 }
 0x1d8   : > { %2469 = vmatmul.mubr.msk.f32.gmra.mrb[22].mxu1 %vm321_vm2, %v1325_v56 }
 0x1e7   : > { %v2300_v61 = vpop.f32.mrb[14].mxu0  ;;  %v2341_v57 = vpop.f32.mrb[4].mxu1 }
 0x1e8   : > { %v2301_v53 = vpop.f32.mrb[15].mxu0  ;;  %v2342_v63 = vpop.f32.mrb[5].mxu1 }
 0x1e9   : > { %v2302_v24 = vadd.f32 %v2301_v53, %v2300_v61  ;;  %v2343_v22 = vadd.f32 %v2342_v63, %v2341_v57 }
 0x1eb   : > { %v1640_v2 = vadd.f32 %v2343_v22, %v3853_v3 }
 0x1ff   : > { %v2344_v5 = vpop.f32.mrb[6].mxu1  ;;  %v2391_v15 = vpop.f32.mrb[16].mxu0 }
 0x200   : > { %v2345_v7 = vpop.f32.mrb[7].mxu1  ;;  %v2392_v59 = vpop.f32.mrb[17].mxu0 }
 0x201   : > { %v2346_v55 = vadd.f32 %v2345_v7, %v2344_v5  ;;  %v2393_v0 = vadd.f32 %v2392_v59, %v2391_v15 }
 0x203   : > { %v1645_v1 = vadd.f32 %v2346_v55, %v3860_v27  ;;  %v1735_v54 = vadd.f32 %v2393_v0, %v1630_v28 }
 0x217   : > { %v2347_v45 = vpop.f32.mrb[8].mxu1  ;;  %v2394_v11 = vpop.f32.mrb[18].mxu0 }
 0x218   : > { %v2348_v50 = vpop.f32.mrb[9].mxu1  ;;  %v2395_v18 = vpop.f32.mrb[19].mxu0 }
 0x219   : > { %v2349_v9 = vadd.f32 %v2348_v50, %v2347_v45  ;;  %v2396_v17 = vadd.f32 %v2395_v18, %v2394_v11 }
 0x21b   : > { %v1650_v8 = vadd.f32 %v2349_v9, %v3874_v46  ;;  %v1740_v6 = vadd.f32 %v2396_v17, %v1635_v26 }
 0x22f   : > { %v2350_v58 = vpop.f32.mrb[10].mxu1  ;;  %v2397_v3 = vpop.f32.mrb[20].mxu0 }
 0x230   : > { %v2351_v20 = vpop.f32.mrb[11].mxu1  ;;  %v2398_v33 = vpop.f32.mrb[21].mxu0 }
 0x231   : > { %v2352_v21 = vadd.f32 %v2351_v20, %v2350_v58  ;;  %v2399_v25 = vadd.f32 %v2398_v33, %v2397_v3 }
 0x233   : > { %v1655_v35 = vadd.f32 %v2352_v21, %v3894_v16  ;;  %v1745_v29 = vadd.f32 %v2399_v25, %v1640_v2 }
 0x246   : > { %v2353_v27 = vpop.f32.mrb[12].mxu1  ;;  %v2400_v28 = vpop.f32.mrb[22].mxu0 }
 0x247   : > { %v2354_v30 = vpop.f32.mrb[13].mxu1  ;;  %v2401_v23 = vpop.f32.mrb[23].mxu0 }
 0x248   : > { %v2355_v62 = vadd.f32 %v2354_v30, %v2353_v27  ;;  %v2402_v34 = vadd.f32 %v2401_v23, %v2400_v28 }
 0x24a   : > { %v1660_v48 = vadd.f32 %v2355_v62, %v2299_v60  ;;  %v1750_v46 = vadd.f32 %v2402_v34, %v1645_v1 }
 0x25e   : > { %v2356_v32 = vpop.f32.mrb[14].mxu1  ;;  %v2403_v44 = vpop.f32.mrb[24].mxu0 }
 0x25f   : > { %v2357_v37 = vpop.f32.mrb[15].mxu1  ;;  %v2404_v42 = vpop.f32.mrb[25].mxu0 }
 0x260   : > { %v2358_v12 = vadd.f32 %v2357_v37, %v2356_v32  ;;  %v2405_v36 = vadd.f32 %v2404_v42, %v2403_v44 }
 0x262   : > { %v1665_v13 = vadd.f32 %v2358_v12, %v2302_v24  ;;  %v1755_v40 = vadd.f32 %v2405_v36, %v1650_v8 }
 0x272   : > { %v2406_v16 = vpop.f32.mrb[26].mxu0 }
 0x273   : > { %v2407_v38 = vpop.f32.mrb[27].mxu0 }
 0x274   : > { %v2408_v19 = vadd.f32 %v2407_v38, %v2406_v16 }
 0x276   : > { %v1760_v39 = vadd.f32 %v2408_v19, %v1655_v35 }
 0x27a   : > { %v2461_v43 = vpop.f32.mrb[16].mxu1 }
 0x27b   : > { %v1845_v31 = vadd.f32 %v2461_v43, %v1740_v6  ;;  %v1839_v41 = vpop.f32.mrb[17].mxu1 }
 0x27c   : > { %v1840_v14 = vadd.f32 %v1839_v41, %v1735_v54 }
 0x27d   : > { %1879 = vst [vmem:[%s3934_s30 + $0x8] sm:$0xff] %v1845_v31 }
 0x27e   : > { %1878 = vst [vmem:[%s3934_s30] sm:$0xff] %v1840_v14 }
 0x286   : > { %v2409_v52 = vpop.f32.mrb[28].mxu0 }
 0x287   : > { %v2410_v4 = vpop.f32.mrb[29].mxu0 }
 0x288   : > { %v2411_v47 = vadd.f32 %v2410_v4, %v2409_v52 }
 0x28a   : > { %v1765_v49 = vadd.f32 %v2411_v47, %v1660_v48 }
 0x28e   : > { %v2464_v60 = vpop.f32.mrb[18].mxu1 }
 0x28f   : > { %v1855_v51 = vadd.f32 %v2464_v60, %v1750_v46  ;;  %v1849_v26 = vpop.f32.mrb[19].mxu1 }
 0x290   : > { %v1850_v10 = vadd.f32 %v1849_v26, %v1745_v29 }
 0x291   : > { %1881 = vst [vmem:[%s3934_s30 + $0x18] sm:$0xff] %v1855_v51 }
 0x292   : > { %1880 = vst [vmem:[%s3934_s30 + $0x10] sm:$0xff] %v1850_v10 }
 0x29a   : > { %v2412_v56 = vpop.f32.mrb[30].mxu0 }
 0x29b   : > { %v2413_v61 = vpop.f32.mrb[31].mxu0 }
 0x29c   : > { %v2414_v57 = vadd.f32 %v2413_v61, %v2412_v56 }
 0x29e   : > { %v1770_v53 = vadd.f32 %v2414_v57, %v1665_v13 }
 0x2a2   : > { %v2467_v63 = vpop.f32.mrb[20].mxu1 }
 0x2a3   : > { %v1865_v24 = vadd.f32 %v2467_v63, %v1760_v39  ;;  %v1859_v22 = vpop.f32.mrb[21].mxu1 }
 0x2a4   : > { %v1860_v2 = vadd.f32 %v1859_v22, %v1755_v40 }
 0x2a5   : > { %1883 = vst [vmem:[%s3934_s30 + $0x28] sm:$0xff] %v1865_v24 }
 0x2a6   : > { %1882 = vst [vmem:[%s3934_s30 + $0x20] sm:$0xff] %v1860_v2 }
 0x2ab   : > { %v2470_v5 = vpop.f32.mrb[22].mxu1 }
 0x2ac   : > { %v1875_v15 = vadd.f32 %v2470_v5, %v1770_v53  ;;  %v1869_v7 = vpop.f32.mrb[23].mxu1 }
 0x2ad   : > { %v1870_v59 = vadd.f32 %v1869_v7, %v1765_v49 }
 0x2ae   : > { %1885 = vst [vmem:[%s3934_s30 + $0x38] sm:$0xff] %v1875_v15 }
 0x2af   : > { %1884 = vst [vmem:[%s3934_s30 + $0x30] sm:$0xff] %v1870_v59 }
 0x2b0   : > { %2682 = shalt.err (!%p2679_p6)
}
 0x2b1   : > { %s2683_s5 = scalar_lea.hbm %s3948_s13, 1024  ;;  %s2687_s30 = scalar_lea.hbm %s4010_s2, 10240 }
 0x2b2   : > { %p2684_p7 = scmp.ne.s32.totalorder %s3948_s13, %s2683_s5  ;;  %p2688_p11 = scmp.lt.u32.totalorder %s3948_s13, %s4010_s2 }
 0x2b3   : > { %p2689_p12 = scmp.lt.u32.totalorder %s2687_s30, %s2683_s5  ;;  %p2691_p0 = scmp.lt.u32.totalorder %s2683_s5, %s3948_s13 }
 0x2b4   : > { %p2685_p9 = pnand %p2684_p7, %p2837_p3 }
 0x2b5   : > { %p2690_p13 = por %p2689_p12, %p2688_p11 }
 0x2b6   : > { %p2686_p10 = pneg %p2685_p9 }
 0x2b7   : > { %p2692_p1 = por %p2691_p0, %p2690_p13 }
 0x2b9   : > { %p2693_p2 = pnand %p2692_p1, %p2686_p10 }
 0x2bb   : > { %2696 = shalt.err (!%p2693_p2)
}
 0x2bc   : > { %s2769_s8 = smov 128   ;;  %s2770_s17 = smov 8  }
 0x2bd   : > { %2593 = dma.vmem_to_hbm [thread:$0]  (%p2837_p3), %s3950_s18, 1024, %s3948_s13, %s3956_s12, %s2769_s8, %s2769_s8, %s2770_s17  }
 0x2be PF: > { %p2599_p4 = scmp.ge.s32.totalorder %s2763_s16, 2  ;;  %s1919_s25 = sand.u32 1, %s2735_s9  }
 0x2bf   : > { %s1920_s26 = scalar_lea.sflag [#allocation4], %s1919_s25 }
 0x2c0   : > { %p2596_p5 = pnand %p2599_p4, %p2846_p8 }
 0x2c2   : > { %2730 = dma.done.wait (!%p2596_p5), %s1920_s26, 1024  }
 0x2c3   : > { %2732 = vsyncadd (!%p2596_p5), %s1920_s26, 4294966272  ;;  %s15_s16 = sadd.s32 1, %s2763_s16   ;;  %s4013_s9 = smov %s2739_s10 }
 0x2c4   : > { %p12_p6 = scmp.ge.s32.totalorder %s15_s16, 12   ;;  %s4014_s10 = smov %s2743_s11 }
 0x2c5   : > { %s4015_s11 = smov %s2855_s27  ;;  %s4016_s12 = smov %s2755_s14 }
 0x2c6   : > { %s4017_s13 = smov %s2759_s15  ;;  %s4018_s14 = smov %s4021_s19 }
 0x2c7   : > { %s4019_s15 = smov %s4025_s20  ;;  %14 = sbr.rel (!%p12_p6) target bundleno = 5 (0x5), region = 72 }
 0x2ce   :  { %1925 = vsyncpa [#allocation4], 1 }
 0x2cf   :  { %1927 = vsyncpa [#allocation4 + $0x1], 1 }

</bundles_post_ra>
